<compile_context>
chip_gen: v7x
topology: tpu7x:2x2x1
jax: 0.10.0
libtpu: 0.0.40
codegen_flags: <defaults>
</compile_context>

<pallas_src>
import functools

import jax
import jax.numpy as jnp
from jax.experimental import pallas as pl
from jax.experimental.pallas import tpu as pltpu


# ----------------------------------------------------------------------------
# Helpers
# ----------------------------------------------------------------------------
def _full_spec(shape):
    """Whole-array BlockSpec (index_map ignores however many grid indices exist)."""
    nd = len(shape)
    return pl.BlockSpec(shape, lambda *args, _nd=nd: (0,) * _nd)


def _batch_tile(batch):
    # Largest sublane-aligned tile that divides the batch.  Even TB=1024 keeps
    # the per-step working set (activations + 300-wide logits, double-buffered)
    # far below v7x's 64 MiB VMEM while amortizing per-grid-step overhead and
    # keeping stores lane-dense.
    for tb in (1024, 512, 256, 128, 64, 32, 16, 8):
        if batch % tb == 0:
            return tb
    return batch


# ----------------------------------------------------------------------------
# Kernel 1 (single launch): fused state branches + action MLP + Gumbel connector
# ----------------------------------------------------------------------------
def _forward_kernel(x_ref,
                    wn1_ref, bn1_ref, wn2_ref, bn2_ref,
                    wg1_ref, bg1_ref, wg2_ref, bg2_ref,
                    wa1_ref, ba1_ref, wa2_ref, ba2_ref, wa3_ref, ba3_ref,
                    g_ref,
                    state_out_ref, action_out_ref,
                    *, hard, inv_tau):
    x = x_ref[...].astype(jnp.float32)

    def mm(a, w, b):
        # bf16 MXU operands, f32 accumulation.
        return (jnp.dot(a.astype(jnp.bfloat16), w.astype(jnp.bfloat16),
                        preferred_element_type=jnp.float32)
                + b.astype(jnp.float32))

    def lrelu(v, slope):
        return jnp.where(v > 0, v, jnp.float32(slope) * v)

    # --- state branches: gen_b(noise_model_b(s_z)), b in {d, a, s} (unrolled) ---
    embs = []
    for br in range(3):
        # noise_model_3 (branch 2) was built with nn.LeakyReLU(True) in the
        # original module, i.e. negative_slope == 1.0 (identity); others 0.01.
        slope1 = 1.0 if br == 2 else 0.01
        h = lrelu(mm(x, wn1_ref[br], bn1_ref[br]), slope1)
        h = lrelu(mm(h, wn2_ref[br], bn2_ref[br]), 0.01)
        h = lrelu(mm(h, wg1_ref[br], bg1_ref[br]), 0.01)
        h = mm(h, wg2_ref[br], bg2_ref[br])
        embs.append(h)
    # torch.cat((d_emb, a_emb, s_emb), dim=-1) stored directly as (TB, 3*SO).
    state_out_ref[...] = jnp.concatenate(embs, axis=-1).astype(state_out_ref.dtype)

    # --- action path: action_gen MLP + GumbelConnector(tau, hard) ---
    h = jnp.maximum(mm(x, wa1_ref[...], ba1_ref[...]), 0.0)
    h = jnp.maximum(mm(h, wa2_ref[...], ba2_ref[...]), 0.0)
    logits = mm(h, wa3_ref[...], ba3_ref[...])
    z = logits + g_ref[...].astype(jnp.float32)          # logits + Gumbel(0,1) noise

    if hard:
        # Straight-through forward value: one-hot(argmax(softmax(z/tau))) ==
        # one-hot(argmax(z)) -> the tau scale and the softmax transcendentals
        # are skipped entirely on the hard path.
        col = jax.lax.broadcasted_iota(jnp.int32, z.shape, 1)
        zmax = jnp.max(z, axis=-1, keepdims=True)
        vdim = z.shape[-1]
        idx = jnp.min(jnp.where(z >= zmax, col, vdim), axis=-1, keepdims=True)
        out = (col == idx).astype(jnp.float32)
    else:
        z = z * jnp.float32(inv_tau)                     # multiply, not divide
        m = jnp.max(z, axis=-1, keepdims=True)
        e = jnp.exp(z - m)
        out = e / jnp.sum(e, axis=-1, keepdims=True)

    action_out_ref[...] = out.astype(action_out_ref.dtype)


def forward_fused(s_z, state_params, action_params, gumbel_noise, *,
                  tau, hard, out_dtype=jnp.float32):
    B, D = s_z.shape
    wn1, bn1, wn2, bn2, wg1, bg1, wg2, bg2 = state_params
    (w1, b1), (w2, b2), (w3, b3) = action_params
    SO = wg2.shape[-1]
    V = w3.shape[-1]
    TB = _batch_tile(B)

    kernel = functools.partial(_forward_kernel, hard=bool(hard),
                               inv_tau=1.0 / float(tau))

    weight_specs = [_full_spec(a.shape) for a in
                    (wn1, bn1, wn2, bn2, wg1, bg1, wg2, bg2,
                     w1, b1, w2, b2, w3, b3)]

    state_rep, action_rep = pl.pallas_call(
        kernel,
        out_shape=(jax.ShapeDtypeStruct((B, 3 * SO), out_dtype),
                   jax.ShapeDtypeStruct((B, V), out_dtype)),
        grid=(B // TB,),
        in_specs=[pl.BlockSpec((TB, D), lambda i: (i, 0))]
                 + weight_specs
                 + [pl.BlockSpec((TB, V), lambda i: (i, 0))],
        out_specs=(pl.BlockSpec((TB, 3 * SO), lambda i: (i, 0)),
                   pl.BlockSpec((TB, V), lambda i: (i, 0))),
        compiler_params=pltpu.CompilerParams(
            dimension_semantics=("parallel",)),   # batch tiles shard across TCs
    )(s_z, wn1, bn1, wn2, bn2, wg1, bg1, wg2, bg2,
      w1, b1, w2, b2, w3, b3, gumbel_noise)
    return state_rep, action_rep


# ----------------------------------------------------------------------------
# Kernel 2: fused l2_norm — one launch, params grouped into stacked 3-D arrays
# ----------------------------------------------------------------------------
def _l2_norm_kernel(l2_lambda, *refs):
    out_ref = refs[-1]                               # (1, 1) f32
    total = jnp.zeros((1, 1), jnp.float32)
    for ref in refs[:-1]:                            # each ref is (N, r, c)
        n = ref.shape[0]
        for i in range(n):
            w = ref[i].astype(jnp.float32)
            total = total + jnp.sqrt(jnp.sum(w * w, keepdims=True))
    out_ref[...] = total * jnp.float32(l2_lambda)


def l2_norm_fused(params, l2_lambda):
    # group same-shape parameters into stacked 3-D arrays -> ~7 refs instead of ~30
    groups = {}
    for p in params:
        p2 = p if p.ndim == 2 else p.reshape(1, -1)
        groups.setdefault(p2.shape, []).append(p2)
    stacks = [jnp.stack(v) for v in groups.values()]

    kernel = functools.partial(_l2_norm_kernel, float(l2_lambda))
    out = pl.pallas_call(
        kernel,
        out_shape=jax.ShapeDtypeStruct((1, 1), jnp.float32),
        in_specs=[_full_spec(s.shape) for s in stacks],
        out_specs=pl.BlockSpec((1, 1), lambda *args: (0, 0)),
    )(*stacks)
    return out[0, 0]


# ----------------------------------------------------------------------------
# Module port (parameter construction + forward glue)
# ----------------------------------------------------------------------------
def _linear_params(key, n_in, n_out):
    # torch.nn.Linear default init; weight stored pre-transposed as [in, out].
    kw, kb = jax.random.split(key)
    bound = 1.0 / (n_in ** 0.5)
    w = jax.random.uniform(kw, (n_in, n_out), jnp.float32, -bound, bound)
    b = jax.random.uniform(kb, (1, n_out), jnp.float32, -bound, bound)
    return w, b


class WoZGeneratorStateVaeJax:
    """JAX/Pallas port of WoZGenerator_StateVae's forward pass."""

    def __init__(self, key, *, batch_size=16, state_noise_dim=64,
                 vae_embed_size=64, gumbel_temp=0.8, l2_lambda=1e-3):
        self.batch_size = batch_size
        self.state_in_size = state_noise_dim
        self.state_out_size = vae_embed_size
        self.action_out_size = 300
        self.temperature = gumbel_temp              # config.gumbel_temp
        self.l2_lambda = float(l2_lambda)
        self.kl_w = 0.0
        self.gumble_length_index = [300]            # gumble_index_multiwoz_binary()
        self.gumble_num = len(self.gumble_length_index)
        # TODO(synk): pickle-loaded mask_onehot replaced by a deterministic eye();
        # it is never consumed by forward().
        self.mask = jnp.eye(self.action_out_size, dtype=jnp.float32)

        keys = iter(jax.random.split(key, 32))
        D, SO = self.state_in_size, self.state_out_size

        def two_layer(n_in, n_mid, n_out):
            return [_linear_params(next(keys), n_in, n_mid),
                    _linear_params(next(keys), n_mid, n_out)]

        # noise_model_{1,2,3}: Linear(D,D) > LeakyReLU > Linear(D,D) > LeakyReLU
        self.noise_models = [two_layer(D, D, D) for _ in range(3)]
        # {d,a,s}_gen: Linear(D,SO) > LeakyReLU > Linear(SO,SO)
        self.gens = [two_layer(D, SO, SO) for _ in range(3)]
        # action_gen: Linear(D,D) > ReLU > Linear(D,2D) > ReLU > Linear(2D,300)
        self.action_gen = [_linear_params(next(keys), D, D),
                           _linear_params(next(keys), D, 2 * D),
                           _linear_params(next(keys), 2 * D, self.action_out_size)]
        # common_model and last_layers are parameters of the module (count in
        # l2_norm) even though forward() never calls them.
        self.common_model = two_layer(D, D, D)
        self.last_layers = [_linear_params(next(keys), self.action_out_size,
                                           self.gumble_length_index[0])]

        # Stacked per-branch weights for the fused state computation.
        def stacked(sel):
            return jnp.stack([sel(b) for b in range(3)])
        self._wn1 = stacked(lambda b: self.noise_models[b][0][0])
        self._bn1 = stacked(lambda b: self.noise_models[b][0][1])
        self._wn2 = stacked(lambda b: self.noise_models[b][1][0])
        self._bn2 = stacked(lambda b: self.noise_models[b][1][1])
        self._wg1 = stacked(lambda b: self.gens[b][0][0])
        self._bg1 = stacked(lambda b: self.gens[b][0][1])
        self._wg2 = stacked(lambda b: self.gens[b][1][0])
        self._bg2 = stacked(lambda b: self.gens[b][1][1])

    def parameters(self):
        ps = []
        for module in (self.common_model, *self.noise_models, *self.gens,
                       self.action_gen, self.last_layers):
            for (w, b) in module:
                ps.append(w)
                ps.append(b)
        return ps

    def _state_params(self):
        return (self._wn1, self._bn1, self._wn2, self._bn2,
                self._wg1, self._bg1, self._wg2, self._bg2)

    # ---- forward:  (state_rep, action_rep) ------------------------------------
    def forward(self, s_z, seed=0):
        # zero_padding in the original forward is created but never used.
        B = s_z.shape[0]
        # TODO(synk): Gumbel noise is produced with jax.random outside the kernel
        # (pltpu.prng_* only lowers on real TPU Mosaic, not the interpret path);
        # at (B, 300) this extra HBM read is negligible.
        g = jax.random.gumbel(jax.random.PRNGKey(seed),
                              (B, self.action_out_size), jnp.float32)
        # gumbel_connector(action_vae, temperature=0.8, hard=True) — fused with
        # the three state branches and the action MLP in a single launch.
        return forward_fused(s_z, self._state_params(), self.action_gen, g,
                             tau=0.8, hard=True)

    def gumbel_connector_soft(self, s_z, seed=0):
        # soft (hard=False) sample of the same connector, for the relaxed path.
        B = s_z.shape[0]
        g = jax.random.gumbel(jax.random.PRNGKey(seed),
                              (B, self.action_out_size), jnp.float32)
        _, action = forward_fused(s_z, self._state_params(), self.action_gen, g,
                                  tau=0.8, hard=False)
        return action

    # ---- BaseModel helpers ------------------------------------------------------
    def valid_loss(self, loss_dict, batch_cnt=None):
        total = jnp.float32(0.0)
        for _, l in loss_dict.items():
            if l is not None:
                total = total + l
        return total

    def model_sel_loss(self, loss_dict, batch_cnt=None):
        return self.valid_loss(loss_dict, batch_cnt)

    def l2_norm(self):
        # sum_i ||W_i||_2 * l2_lambda, fused into a single pallas_call.
        return l2_norm_fused(self.parameters(), self.l2_lambda)


if __name__ == "__main__":
    key = jax.random.PRNGKey(0)
    k_model, k_sz = jax.random.split(key)

    B, D, SO = 16, 64, 64
    model = WoZGeneratorStateVaeJax(k_model, batch_size=B, state_noise_dim=D,
                                    vae_embed_size=SO, gumbel_temp=0.8,
                                    l2_lambda=1e-3)
    s_z = jax.random.normal(k_sz, (B, D), dtype=jnp.float32)

    # Forward pass: ONE Pallas launch (state branches + action MLP + Gumbel).
    state_rep, action_rep = model.forward(s_z, seed=1234)
    state_rep, action_rep = jax.block_until_ready((state_rep, action_rep))

    assert state_rep.shape == (B, 3 * SO)
    assert action_rep.shape == (B, 300)
    assert bool(jnp.all(jnp.isfinite(state_rep)))
    # hard=True straight-through value: each row is an exact one-hot
    row_sums = jnp.sum(action_rep, axis=-1)
    assert bool(jnp.all(jnp.abs(row_sums - 1.0) < 1e-5)), "hard rows must sum to 1"
    assert bool(jnp.all((action_rep == 0.0) | (action_rep == 1.0)))

    # Soft path exercises exp + normalization: rows sum to ~1.
    soft = jax.block_until_ready(model.gumbel_connector_soft(s_z, seed=1234))
    soft_sums = jnp.sum(soft, axis=-1)
    assert bool(jnp.all(jnp.abs(soft_sums - 1.0) < 1e-3)), "soft rows must sum to ~1"

    # Fused single-launch l2_norm + valid_loss glue.
    l2 = jax.block_until_ready(model.l2_norm())
    total = jax.block_until_ready(model.valid_loss(
        {"nll": jnp.float32(1.25), "kl": jnp.float32(0.5), "aux": None}))
    assert bool(jnp.isfinite(l2)) and bool(jnp.isfinite(total))

    print("KERNEL_OK")
</pallas_src>

<mosaic_0001>
module attributes {stable_mosaic.version = 11 : i64} {
  func.func @_forward_kernel(%arg0: i32, %arg1: memref<16x64xf32, #tpu.memory_space<vmem>>, %arg2: memref<3x64x64xf32, #tpu.memory_space<vmem>>, %arg3: memref<3x1x64xf32, #tpu.memory_space<vmem>>, %arg4: memref<3x64x64xf32, #tpu.memory_space<vmem>>, %arg5: memref<3x1x64xf32, #tpu.memory_space<vmem>>, %arg6: memref<3x64x64xf32, #tpu.memory_space<vmem>>, %arg7: memref<3x1x64xf32, #tpu.memory_space<vmem>>, %arg8: memref<3x64x64xf32, #tpu.memory_space<vmem>>, %arg9: memref<3x1x64xf32, #tpu.memory_space<vmem>>, %arg10: memref<64x64xf32, #tpu.memory_space<vmem>>, %arg11: memref<1x64xf32, #tpu.memory_space<vmem>>, %arg12: memref<64x128xf32, #tpu.memory_space<vmem>>, %arg13: memref<1x128xf32, #tpu.memory_space<vmem>>, %arg14: memref<128x300xf32, #tpu.memory_space<vmem>>, %arg15: memref<1x300xf32, #tpu.memory_space<vmem>>, %arg16: memref<16x300xf32, #tpu.memory_space<vmem>>, %arg17: memref<16x192xf32, #tpu.memory_space<vmem>>, %arg18: memref<16x300xf32, #tpu.memory_space<vmem>>) attributes {dimension_semantics = [#tpu.dimension_semantics<parallel>], iteration_bounds = array<i64: 1>, scalar_prefetch = 0 : i64, scratch_operands = 0 : i64, tpu.core_type = #tpu.core_type<tc>, window_params = [{transform_indices = @transform_0, window_bounds = array<i64: 16, 64>}, {pipeline_mode = #tpu.pipeline_mode<synchronous>, transform_indices = @transform_1, window_bounds = array<i64: 3, 64, 64>}, {pipeline_mode = #tpu.pipeline_mode<synchronous>, transform_indices = @transform_2, window_bounds = array<i64: 3, 1, 64>}, {pipeline_mode = #tpu.pipeline_mode<synchronous>, transform_indices = @transform_3, window_bounds = array<i64: 3, 64, 64>}, {pipeline_mode = #tpu.pipeline_mode<synchronous>, transform_indices = @transform_4, window_bounds = array<i64: 3, 1, 64>}, {pipeline_mode = #tpu.pipeline_mode<synchronous>, transform_indices = @transform_5, window_bounds = array<i64: 3, 64, 64>}, {pipeline_mode = #tpu.pipeline_mode<synchronous>, transform_indices = @transform_6, window_bounds = array<i64: 3, 1, 64>}, {pipeline_mode = #tpu.pipeline_mode<synchronous>, transform_indices = @transform_7, window_bounds = array<i64: 3, 64, 64>}, {pipeline_mode = #tpu.pipeline_mode<synchronous>, transform_indices = @transform_8, window_bounds = array<i64: 3, 1, 64>}, {pipeline_mode = #tpu.pipeline_mode<synchronous>, transform_indices = @transform_9, window_bounds = array<i64: 64, 64>}, {pipeline_mode = #tpu.pipeline_mode<synchronous>, transform_indices = @transform_10, window_bounds = array<i64: 1, 64>}, {pipeline_mode = #tpu.pipeline_mode<synchronous>, transform_indices = @transform_11, window_bounds = array<i64: 64, 128>}, {pipeline_mode = #tpu.pipeline_mode<synchronous>, transform_indices = @transform_12, window_bounds = array<i64: 1, 128>}, {pipeline_mode = #tpu.pipeline_mode<synchronous>, transform_indices = @transform_13, window_bounds = array<i64: 128, 300>}, {pipeline_mode = #tpu.pipeline_mode<synchronous>, transform_indices = @transform_14, window_bounds = array<i64: 1, 300>}, {transform_indices = @transform_15, window_bounds = array<i64: 16, 300>}, {transform_indices = @transform_16, window_bounds = array<i64: 16, 192>}, {transform_indices = @transform_17, window_bounds = array<i64: 16, 300>}]} {
    %c0 = arith.constant 0 : index
    %c0_0 = arith.constant 0 : index
    %0 = vector.load %arg1[%c0, %c0_0] : memref<16x64xf32, #tpu.memory_space<vmem>>, vector<16x64xf32>
    %c0_1 = arith.constant 0 : index
    %c0_2 = arith.constant 0 : index
    %c0_3 = arith.constant 0 : index
    %1 = vector.load %arg2[%c0_1, %c0_2, %c0_3] : memref<3x64x64xf32, #tpu.memory_space<vmem>>, vector<1x64x64xf32>
    %2 = vector.shape_cast %1 : vector<1x64x64xf32> to vector<64x64xf32>
    %c0_4 = arith.constant 0 : index
    %c0_5 = arith.constant 0 : index
    %c0_6 = arith.constant 0 : index
    %3 = vector.load %arg3[%c0_4, %c0_5, %c0_6] : memref<3x1x64xf32, #tpu.memory_space<vmem>>, vector<1x1x64xf32>
    %4 = vector.shape_cast %3 : vector<1x1x64xf32> to vector<1x64xf32>
    %5 = arith.truncf %0 : vector<16x64xf32> to vector<16x64xbf16>
    %6 = arith.truncf %2 : vector<64x64xf32> to vector<64x64xbf16>
    %cst = arith.constant dense<0.000000e+00> : vector<16x64xf32>
    %7 = tpu.matmul %5, %6, %cst {dimension_numbers = #tpu.dot_dimension_numbers<[1], [0], [0], [1], [0, 0, 1, 1], [], []>} : vector<16x64xbf16>, vector<64x64xbf16>, vector<16x64xf32> -> vector<16x64xf32>
    %8 = vector.broadcast %4 : vector<1x64xf32> to vector<16x64xf32>
    %9 = arith.addf %7, %8 : vector<16x64xf32>
    %cst_7 = arith.constant 0.000000e+00 : f32
    %10 = vector.broadcast %cst_7 : f32 to vector<16x64xf32>
    %11 = arith.cmpf ogt, %9, %10 : vector<16x64xf32>
    %cst_8 = arith.constant 0.00999999977 : f32
    %12 = vector.broadcast %cst_8 : f32 to vector<16x64xf32>
    %13 = arith.mulf %12, %9 : vector<16x64xf32>
    %14 = arith.select %11, %9, %13 : vector<16x64xi1>, vector<16x64xf32>
    %c0_9 = arith.constant 0 : index
    %c0_10 = arith.constant 0 : index
    %c0_11 = arith.constant 0 : index
    %15 = vector.load %arg4[%c0_9, %c0_10, %c0_11] : memref<3x64x64xf32, #tpu.memory_space<vmem>>, vector<1x64x64xf32>
    %16 = vector.shape_cast %15 : vector<1x64x64xf32> to vector<64x64xf32>
    %c0_12 = arith.constant 0 : index
    %c0_13 = arith.constant 0 : index
    %c0_14 = arith.constant 0 : index
    %17 = vector.load %arg5[%c0_12, %c0_13, %c0_14] : memref<3x1x64xf32, #tpu.memory_space<vmem>>, vector<1x1x64xf32>
    %18 = vector.shape_cast %17 : vector<1x1x64xf32> to vector<1x64xf32>
    %19 = arith.truncf %14 : vector<16x64xf32> to vector<16x64xbf16>
    %20 = arith.truncf %16 : vector<64x64xf32> to vector<64x64xbf16>
    %cst_15 = arith.constant dense<0.000000e+00> : vector<16x64xf32>
    %21 = tpu.matmul %19, %20, %cst_15 {dimension_numbers = #tpu.dot_dimension_numbers<[1], [0], [0], [1], [0, 0, 1, 1], [], []>} : vector<16x64xbf16>, vector<64x64xbf16>, vector<16x64xf32> -> vector<16x64xf32>
    %22 = vector.broadcast %18 : vector<1x64xf32> to vector<16x64xf32>
    %23 = arith.addf %21, %22 : vector<16x64xf32>
    %cst_16 = arith.constant 0.000000e+00 : f32
    %24 = vector.broadcast %cst_16 : f32 to vector<16x64xf32>
    %25 = arith.cmpf ogt, %23, %24 : vector<16x64xf32>
    %cst_17 = arith.constant 0.00999999977 : f32
    %26 = vector.broadcast %cst_17 : f32 to vector<16x64xf32>
    %27 = arith.mulf %26, %23 : vector<16x64xf32>
    %28 = arith.select %25, %23, %27 : vector<16x64xi1>, vector<16x64xf32>
    %c0_18 = arith.constant 0 : index
    %c0_19 = arith.constant 0 : index
    %c0_20 = arith.constant 0 : index
    %29 = vector.load %arg6[%c0_18, %c0_19, %c0_20] : memref<3x64x64xf32, #tpu.memory_space<vmem>>, vector<1x64x64xf32>
    %30 = vector.shape_cast %29 : vector<1x64x64xf32> to vector<64x64xf32>
    %c0_21 = arith.constant 0 : index
    %c0_22 = arith.constant 0 : index
    %c0_23 = arith.constant 0 : index
    %31 = vector.load %arg7[%c0_21, %c0_22, %c0_23] : memref<3x1x64xf32, #tpu.memory_space<vmem>>, vector<1x1x64xf32>
    %32 = vector.shape_cast %31 : vector<1x1x64xf32> to vector<1x64xf32>
    %33 = arith.truncf %28 : vector<16x64xf32> to vector<16x64xbf16>
    %34 = arith.truncf %30 : vector<64x64xf32> to vector<64x64xbf16>
    %cst_24 = arith.constant dense<0.000000e+00> : vector<16x64xf32>
    %35 = tpu.matmul %33, %34, %cst_24 {dimension_numbers = #tpu.dot_dimension_numbers<[1], [0], [0], [1], [0, 0, 1, 1], [], []>} : vector<16x64xbf16>, vector<64x64xbf16>, vector<16x64xf32> -> vector<16x64xf32>
    %36 = vector.broadcast %32 : vector<1x64xf32> to vector<16x64xf32>
    %37 = arith.addf %35, %36 : vector<16x64xf32>
    %cst_25 = arith.constant 0.000000e+00 : f32
    %38 = vector.broadcast %cst_25 : f32 to vector<16x64xf32>
    %39 = arith.cmpf ogt, %37, %38 : vector<16x64xf32>
    %cst_26 = arith.constant 0.00999999977 : f32
    %40 = vector.broadcast %cst_26 : f32 to vector<16x64xf32>
    %41 = arith.mulf %40, %37 : vector<16x64xf32>
    %42 = arith.select %39, %37, %41 : vector<16x64xi1>, vector<16x64xf32>
    %c0_27 = arith.constant 0 : index
    %c0_28 = arith.constant 0 : index
    %c0_29 = arith.constant 0 : index
    %43 = vector.load %arg8[%c0_27, %c0_28, %c0_29] : memref<3x64x64xf32, #tpu.memory_space<vmem>>, vector<1x64x64xf32>
    %44 = vector.shape_cast %43 : vector<1x64x64xf32> to vector<64x64xf32>
    %c0_30 = arith.constant 0 : index
    %c0_31 = arith.constant 0 : index
    %c0_32 = arith.constant 0 : index
    %45 = vector.load %arg9[%c0_30, %c0_31, %c0_32] : memref<3x1x64xf32, #tpu.memory_space<vmem>>, vector<1x1x64xf32>
    %46 = vector.shape_cast %45 : vector<1x1x64xf32> to vector<1x64xf32>
    %47 = arith.truncf %42 : vector<16x64xf32> to vector<16x64xbf16>
    %48 = arith.truncf %44 : vector<64x64xf32> to vector<64x64xbf16>
    %cst_33 = arith.constant dense<0.000000e+00> : vector<16x64xf32>
    %49 = tpu.matmul %47, %48, %cst_33 {dimension_numbers = #tpu.dot_dimension_numbers<[1], [0], [0], [1], [0, 0, 1, 1], [], []>} : vector<16x64xbf16>, vector<64x64xbf16>, vector<16x64xf32> -> vector<16x64xf32>
    %50 = vector.broadcast %46 : vector<1x64xf32> to vector<16x64xf32>
    %51 = arith.addf %49, %50 : vector<16x64xf32>
    %c1 = arith.constant 1 : index
    %c0_34 = arith.constant 0 : index
    %c0_35 = arith.constant 0 : index
    %52 = vector.load %arg2[%c1, %c0_34, %c0_35] : memref<3x64x64xf32, #tpu.memory_space<vmem>>, vector<1x64x64xf32>
    %53 = vector.shape_cast %52 : vector<1x64x64xf32> to vector<64x64xf32>
    %c1_36 = arith.constant 1 : index
    %c0_37 = arith.constant 0 : index
    %c0_38 = arith.constant 0 : index
    %54 = vector.load %arg3[%c1_36, %c0_37, %c0_38] : memref<3x1x64xf32, #tpu.memory_space<vmem>>, vector<1x1x64xf32>
    %55 = vector.shape_cast %54 : vector<1x1x64xf32> to vector<1x64xf32>
    %56 = arith.truncf %0 : vector<16x64xf32> to vector<16x64xbf16>
    %57 = arith.truncf %53 : vector<64x64xf32> to vector<64x64xbf16>
    %cst_39 = arith.constant dense<0.000000e+00> : vector<16x64xf32>
    %58 = tpu.matmul %56, %57, %cst_39 {dimension_numbers = #tpu.dot_dimension_numbers<[1], [0], [0], [1], [0, 0, 1, 1], [], []>} : vector<16x64xbf16>, vector<64x64xbf16>, vector<16x64xf32> -> vector<16x64xf32>
    %59 = vector.broadcast %55 : vector<1x64xf32> to vector<16x64xf32>
    %60 = arith.addf %58, %59 : vector<16x64xf32>
    %cst_40 = arith.constant 0.000000e+00 : f32
    %61 = vector.broadcast %cst_40 : f32 to vector<16x64xf32>
    %62 = arith.cmpf ogt, %60, %61 : vector<16x64xf32>
    %cst_41 = arith.constant 0.00999999977 : f32
    %63 = vector.broadcast %cst_41 : f32 to vector<16x64xf32>
    %64 = arith.mulf %63, %60 : vector<16x64xf32>
    %65 = arith.select %62, %60, %64 : vector<16x64xi1>, vector<16x64xf32>
    %c1_42 = arith.constant 1 : index
    %c0_43 = arith.constant 0 : index
    %c0_44 = arith.constant 0 : index
    %66 = vector.load %arg4[%c1_42, %c0_43, %c0_44] : memref<3x64x64xf32, #tpu.memory_space<vmem>>, vector<1x64x64xf32>
    %67 = vector.shape_cast %66 : vector<1x64x64xf32> to vector<64x64xf32>
    %c1_45 = arith.constant 1 : index
    %c0_46 = arith.constant 0 : index
    %c0_47 = arith.constant 0 : index
    %68 = vector.load %arg5[%c1_45, %c0_46, %c0_47] : memref<3x1x64xf32, #tpu.memory_space<vmem>>, vector<1x1x64xf32>
    %69 = vector.shape_cast %68 : vector<1x1x64xf32> to vector<1x64xf32>
    %70 = arith.truncf %65 : vector<16x64xf32> to vector<16x64xbf16>
    %71 = arith.truncf %67 : vector<64x64xf32> to vector<64x64xbf16>
    %cst_48 = arith.constant dense<0.000000e+00> : vector<16x64xf32>
    %72 = tpu.matmul %70, %71, %cst_48 {dimension_numbers = #tpu.dot_dimension_numbers<[1], [0], [0], [1], [0, 0, 1, 1], [], []>} : vector<16x64xbf16>, vector<64x64xbf16>, vector<16x64xf32> -> vector<16x64xf32>
    %73 = vector.broadcast %69 : vector<1x64xf32> to vector<16x64xf32>
    %74 = arith.addf %72, %73 : vector<16x64xf32>
    %cst_49 = arith.constant 0.000000e+00 : f32
    %75 = vector.broadcast %cst_49 : f32 to vector<16x64xf32>
    %76 = arith.cmpf ogt, %74, %75 : vector<16x64xf32>
    %cst_50 = arith.constant 0.00999999977 : f32
    %77 = vector.broadcast %cst_50 : f32 to vector<16x64xf32>
    %78 = arith.mulf %77, %74 : vector<16x64xf32>
    %79 = arith.select %76, %74, %78 : vector<16x64xi1>, vector<16x64xf32>
    %c1_51 = arith.constant 1 : index
    %c0_52 = arith.constant 0 : index
    %c0_53 = arith.constant 0 : index
    %80 = vector.load %arg6[%c1_51, %c0_52, %c0_53] : memref<3x64x64xf32, #tpu.memory_space<vmem>>, vector<1x64x64xf32>
    %81 = vector.shape_cast %80 : vector<1x64x64xf32> to vector<64x64xf32>
    %c1_54 = arith.constant 1 : index
    %c0_55 = arith.constant 0 : index
    %c0_56 = arith.constant 0 : index
    %82 = vector.load %arg7[%c1_54, %c0_55, %c0_56] : memref<3x1x64xf32, #tpu.memory_space<vmem>>, vector<1x1x64xf32>
    %83 = vector.shape_cast %82 : vector<1x1x64xf32> to vector<1x64xf32>
    %84 = arith.truncf %79 : vector<16x64xf32> to vector<16x64xbf16>
    %85 = arith.truncf %81 : vector<64x64xf32> to vector<64x64xbf16>
    %cst_57 = arith.constant dense<0.000000e+00> : vector<16x64xf32>
    %86 = tpu.matmul %84, %85, %cst_57 {dimension_numbers = #tpu.dot_dimension_numbers<[1], [0], [0], [1], [0, 0, 1, 1], [], []>} : vector<16x64xbf16>, vector<64x64xbf16>, vector<16x64xf32> -> vector<16x64xf32>
    %87 = vector.broadcast %83 : vector<1x64xf32> to vector<16x64xf32>
    %88 = arith.addf %86, %87 : vector<16x64xf32>
    %cst_58 = arith.constant 0.000000e+00 : f32
    %89 = vector.broadcast %cst_58 : f32 to vector<16x64xf32>
    %90 = arith.cmpf ogt, %88, %89 : vector<16x64xf32>
    %cst_59 = arith.constant 0.00999999977 : f32
    %91 = vector.broadcast %cst_59 : f32 to vector<16x64xf32>
    %92 = arith.mulf %91, %88 : vector<16x64xf32>
    %93 = arith.select %90, %88, %92 : vector<16x64xi1>, vector<16x64xf32>
    %c1_60 = arith.constant 1 : index
    %c0_61 = arith.constant 0 : index
    %c0_62 = arith.constant 0 : index
    %94 = vector.load %arg8[%c1_60, %c0_61, %c0_62] : memref<3x64x64xf32, #tpu.memory_space<vmem>>, vector<1x64x64xf32>
    %95 = vector.shape_cast %94 : vector<1x64x64xf32> to vector<64x64xf32>
    %c1_63 = arith.constant 1 : index
    %c0_64 = arith.constant 0 : index
    %c0_65 = arith.constant 0 : index
    %96 = vector.load %arg9[%c1_63, %c0_64, %c0_65] : memref<3x1x64xf32, #tpu.memory_space<vmem>>, vector<1x1x64xf32>
    %97 = vector.shape_cast %96 : vector<1x1x64xf32> to vector<1x64xf32>
    %98 = arith.truncf %93 : vector<16x64xf32> to vector<16x64xbf16>
    %99 = arith.truncf %95 : vector<64x64xf32> to vector<64x64xbf16>
    %cst_66 = arith.constant dense<0.000000e+00> : vector<16x64xf32>
    %100 = tpu.matmul %98, %99, %cst_66 {dimension_numbers = #tpu.dot_dimension_numbers<[1], [0], [0], [1], [0, 0, 1, 1], [], []>} : vector<16x64xbf16>, vector<64x64xbf16>, vector<16x64xf32> -> vector<16x64xf32>
    %101 = vector.broadcast %97 : vector<1x64xf32> to vector<16x64xf32>
    %102 = arith.addf %100, %101 : vector<16x64xf32>
    %c2 = arith.constant 2 : index
    %c0_67 = arith.constant 0 : index
    %c0_68 = arith.constant 0 : index
    %103 = vector.load %arg2[%c2, %c0_67, %c0_68] : memref<3x64x64xf32, #tpu.memory_space<vmem>>, vector<1x64x64xf32>
    %104 = vector.shape_cast %103 : vector<1x64x64xf32> to vector<64x64xf32>
    %c2_69 = arith.constant 2 : index
    %c0_70 = arith.constant 0 : index
    %c0_71 = arith.constant 0 : index
    %105 = vector.load %arg3[%c2_69, %c0_70, %c0_71] : memref<3x1x64xf32, #tpu.memory_space<vmem>>, vector<1x1x64xf32>
    %106 = vector.shape_cast %105 : vector<1x1x64xf32> to vector<1x64xf32>
    %107 = arith.truncf %0 : vector<16x64xf32> to vector<16x64xbf16>
    %108 = arith.truncf %104 : vector<64x64xf32> to vector<64x64xbf16>
    %cst_72 = arith.constant dense<0.000000e+00> : vector<16x64xf32>
    %109 = tpu.matmul %107, %108, %cst_72 {dimension_numbers = #tpu.dot_dimension_numbers<[1], [0], [0], [1], [0, 0, 1, 1], [], []>} : vector<16x64xbf16>, vector<64x64xbf16>, vector<16x64xf32> -> vector<16x64xf32>
    %110 = vector.broadcast %106 : vector<1x64xf32> to vector<16x64xf32>
    %111 = arith.addf %109, %110 : vector<16x64xf32>
    %cst_73 = arith.constant 0.000000e+00 : f32
    %112 = vector.broadcast %cst_73 : f32 to vector<16x64xf32>
    %113 = arith.cmpf ogt, %111, %112 : vector<16x64xf32>
    %cst_74 = arith.constant 1.000000e+00 : f32
    %114 = vector.broadcast %cst_74 : f32 to vector<16x64xf32>
    %115 = arith.mulf %114, %111 : vector<16x64xf32>
    %116 = arith.select %113, %111, %115 : vector<16x64xi1>, vector<16x64xf32>
    %c2_75 = arith.constant 2 : index
    %c0_76 = arith.constant 0 : index
    %c0_77 = arith.constant 0 : index
    %117 = vector.load %arg4[%c2_75, %c0_76, %c0_77] : memref<3x64x64xf32, #tpu.memory_space<vmem>>, vector<1x64x64xf32>
    %118 = vector.shape_cast %117 : vector<1x64x64xf32> to vector<64x64xf32>
    %c2_78 = arith.constant 2 : index
    %c0_79 = arith.constant 0 : index
    %c0_80 = arith.constant 0 : index
    %119 = vector.load %arg5[%c2_78, %c0_79, %c0_80] : memref<3x1x64xf32, #tpu.memory_space<vmem>>, vector<1x1x64xf32>
    %120 = vector.shape_cast %119 : vector<1x1x64xf32> to vector<1x64xf32>
    %121 = arith.truncf %116 : vector<16x64xf32> to vector<16x64xbf16>
    %122 = arith.truncf %118 : vector<64x64xf32> to vector<64x64xbf16>
    %cst_81 = arith.constant dense<0.000000e+00> : vector<16x64xf32>
    %123 = tpu.matmul %121, %122, %cst_81 {dimension_numbers = #tpu.dot_dimension_numbers<[1], [0], [0], [1], [0, 0, 1, 1], [], []>} : vector<16x64xbf16>, vector<64x64xbf16>, vector<16x64xf32> -> vector<16x64xf32>
    %124 = vector.broadcast %120 : vector<1x64xf32> to vector<16x64xf32>
    %125 = arith.addf %123, %124 : vector<16x64xf32>
    %cst_82 = arith.constant 0.000000e+00 : f32
    %126 = vector.broadcast %cst_82 : f32 to vector<16x64xf32>
    %127 = arith.cmpf ogt, %125, %126 : vector<16x64xf32>
    %cst_83 = arith.constant 0.00999999977 : f32
    %128 = vector.broadcast %cst_83 : f32 to vector<16x64xf32>
    %129 = arith.mulf %128, %125 : vector<16x64xf32>
    %130 = arith.select %127, %125, %129 : vector<16x64xi1>, vector<16x64xf32>
    %c2_84 = arith.constant 2 : index
    %c0_85 = arith.constant 0 : index
    %c0_86 = arith.constant 0 : index
    %131 = vector.load %arg6[%c2_84, %c0_85, %c0_86] : memref<3x64x64xf32, #tpu.memory_space<vmem>>, vector<1x64x64xf32>
    %132 = vector.shape_cast %131 : vector<1x64x64xf32> to vector<64x64xf32>
    %c2_87 = arith.constant 2 : index
    %c0_88 = arith.constant 0 : index
    %c0_89 = arith.constant 0 : index
    %133 = vector.load %arg7[%c2_87, %c0_88, %c0_89] : memref<3x1x64xf32, #tpu.memory_space<vmem>>, vector<1x1x64xf32>
    %134 = vector.shape_cast %133 : vector<1x1x64xf32> to vector<1x64xf32>
    %135 = arith.truncf %130 : vector<16x64xf32> to vector<16x64xbf16>
    %136 = arith.truncf %132 : vector<64x64xf32> to vector<64x64xbf16>
    %cst_90 = arith.constant dense<0.000000e+00> : vector<16x64xf32>
    %137 = tpu.matmul %135, %136, %cst_90 {dimension_numbers = #tpu.dot_dimension_numbers<[1], [0], [0], [1], [0, 0, 1, 1], [], []>} : vector<16x64xbf16>, vector<64x64xbf16>, vector<16x64xf32> -> vector<16x64xf32>
    %138 = vector.broadcast %134 : vector<1x64xf32> to vector<16x64xf32>
    %139 = arith.addf %137, %138 : vector<16x64xf32>
    %cst_91 = arith.constant 0.000000e+00 : f32
    %140 = vector.broadcast %cst_91 : f32 to vector<16x64xf32>
    %141 = arith.cmpf ogt, %139, %140 : vector<16x64xf32>
    %cst_92 = arith.constant 0.00999999977 : f32
    %142 = vector.broadcast %cst_92 : f32 to vector<16x64xf32>
    %143 = arith.mulf %142, %139 : vector<16x64xf32>
    %144 = arith.select %141, %139, %143 : vector<16x64xi1>, vector<16x64xf32>
    %c2_93 = arith.constant 2 : index
    %c0_94 = arith.constant 0 : index
    %c0_95 = arith.constant 0 : index
    %145 = vector.load %arg8[%c2_93, %c0_94, %c0_95] : memref<3x64x64xf32, #tpu.memory_space<vmem>>, vector<1x64x64xf32>
    %146 = vector.shape_cast %145 : vector<1x64x64xf32> to vector<64x64xf32>
    %c2_96 = arith.constant 2 : index
    %c0_97 = arith.constant 0 : index
    %c0_98 = arith.constant 0 : index
    %147 = vector.load %arg9[%c2_96, %c0_97, %c0_98] : memref<3x1x64xf32, #tpu.memory_space<vmem>>, vector<1x1x64xf32>
    %148 = vector.shape_cast %147 : vector<1x1x64xf32> to vector<1x64xf32>
    %149 = arith.truncf %144 : vector<16x64xf32> to vector<16x64xbf16>
    %150 = arith.truncf %146 : vector<64x64xf32> to vector<64x64xbf16>
    %cst_99 = arith.constant dense<0.000000e+00> : vector<16x64xf32>
    %151 = tpu.matmul %149, %150, %cst_99 {dimension_numbers = #tpu.dot_dimension_numbers<[1], [0], [0], [1], [0, 0, 1, 1], [], []>} : vector<16x64xbf16>, vector<64x64xbf16>, vector<16x64xf32> -> vector<16x64xf32>
    %152 = vector.broadcast %148 : vector<1x64xf32> to vector<16x64xf32>
    %153 = arith.addf %151, %152 : vector<16x64xf32>
    %154 = tpu.concatenate %51, %102, %153 in 1 : vector<16x64xf32>, vector<16x64xf32>, vector<16x64xf32> -> vector<16x192xf32>
    %c0_100 = arith.constant 0 : index
    %c0_101 = arith.constant 0 : index
    %155 = vector.load %arg17[%c0_100, %c0_101] : memref<16x192xf32, #tpu.memory_space<vmem>>, vector<16x192xf32>
    tpu.vector_store %arg17[%c0_100, %c0_101], %154 {strides = array<i32>} : memref<16x192xf32, #tpu.memory_space<vmem>>, vector<16x192xf32>,
    %c0_102 = arith.constant 0 : index
    %c0_103 = arith.constant 0 : index
    %156 = vector.load %arg10[%c0_102, %c0_103] : memref<64x64xf32, #tpu.memory_space<vmem>>, vector<64x64xf32>
    %c0_104 = arith.constant 0 : index
    %c0_105 = arith.constant 0 : index
    %157 = vector.load %arg11[%c0_104, %c0_105] : memref<1x64xf32, #tpu.memory_space<vmem>>, vector<1x64xf32>
    %158 = arith.truncf %0 : vector<16x64xf32> to vector<16x64xbf16>
    %159 = arith.truncf %156 : vector<64x64xf32> to vector<64x64xbf16>
    %cst_106 = arith.constant dense<0.000000e+00> : vector<16x64xf32>
    %160 = tpu.matmul %158, %159, %cst_106 {dimension_numbers = #tpu.dot_dimension_numbers<[1], [0], [0], [1], [0, 0, 1, 1], [], []>} : vector<16x64xbf16>, vector<64x64xbf16>, vector<16x64xf32> -> vector<16x64xf32>
    %161 = vector.broadcast %157 : vector<1x64xf32> to vector<16x64xf32>
    %162 = arith.addf %160, %161 : vector<16x64xf32>
    %cst_107 = arith.constant 0.000000e+00 : f32
    %163 = vector.broadcast %cst_107 : f32 to vector<16x64xf32>
    %164 = arith.maximumf %162, %163 : vector<16x64xf32>
    %c0_108 = arith.constant 0 : index
    %c0_109 = arith.constant 0 : index
    %165 = vector.load %arg12[%c0_108, %c0_109] : memref<64x128xf32, #tpu.memory_space<vmem>>, vector<64x128xf32>
    %c0_110 = arith.constant 0 : index
    %c0_111 = arith.constant 0 : index
    %166 = vector.load %arg13[%c0_110, %c0_111] : memref<1x128xf32, #tpu.memory_space<vmem>>, vector<1x128xf32>
    %167 = arith.truncf %164 : vector<16x64xf32> to vector<16x64xbf16>
    %168 = arith.truncf %165 : vector<64x128xf32> to vector<64x128xbf16>
    %cst_112 = arith.constant dense<0.000000e+00> : vector<16x128xf32>
    %169 = tpu.matmul %167, %168, %cst_112 {dimension_numbers = #tpu.dot_dimension_numbers<[1], [0], [0], [1], [0, 0, 1, 1], [], []>} : vector<16x64xbf16>, vector<64x128xbf16>, vector<16x128xf32> -> vector<16x128xf32>
    %170 = vector.broadcast %166 : vector<1x128xf32> to vector<16x128xf32>
    %171 = arith.addf %169, %170 : vector<16x128xf32>
    %cst_113 = arith.constant 0.000000e+00 : f32
    %172 = vector.broadcast %cst_113 : f32 to vector<16x128xf32>
    %173 = arith.maximumf %171, %172 : vector<16x128xf32>
    %c0_114 = arith.constant 0 : index
    %c0_115 = arith.constant 0 : index
    %174 = vector.load %arg14[%c0_114, %c0_115] : memref<128x300xf32, #tpu.memory_space<vmem>>, vector<128x300xf32>
    %c0_116 = arith.constant 0 : index
    %c0_117 = arith.constant 0 : index
    %175 = vector.load %arg15[%c0_116, %c0_117] : memref<1x300xf32, #tpu.memory_space<vmem>>, vector<1x300xf32>
    %176 = arith.truncf %173 : vector<16x128xf32> to vector<16x128xbf16>
    %177 = arith.truncf %174 : vector<128x300xf32> to vector<128x300xbf16>
    %cst_118 = arith.constant dense<0.000000e+00> : vector<16x300xf32>
    %178 = tpu.matmul %176, %177, %cst_118 {dimension_numbers = #tpu.dot_dimension_numbers<[1], [0], [0], [1], [0, 0, 1, 1], [], []>} : vector<16x128xbf16>, vector<128x300xbf16>, vector<16x300xf32> -> vector<16x300xf32>
    %179 = vector.broadcast %175 : vector<1x300xf32> to vector<16x300xf32>
    %180 = arith.addf %178, %179 : vector<16x300xf32>
    %c0_119 = arith.constant 0 : index
    %c0_120 = arith.constant 0 : index
    %181 = vector.load %arg16[%c0_119, %c0_120] : memref<16x300xf32, #tpu.memory_space<vmem>>, vector<16x300xf32>
    %182 = arith.addf %180, %181 : vector<16x300xf32>
    %183 = tpu.iota {dimensions = array<i32: 1>} : vector<16x300xi32>
    %cst_121 = arith.constant dense<0xFF800000> : vector<16xf32>
    %184 = vector.multi_reduction <maximumf>, %182, %cst_121 [1] : vector<16x300xf32> to vector<16xf32>
    %185 = vector.shape_cast %184 : vector<16xf32> to vector<16x1xf32>
    %186 = vector.broadcast %185 : vector<16x1xf32> to vector<16x300xf32>
    %187 = arith.cmpf oge, %182, %186 : vector<16x300xf32>
    %c300_i32 = arith.constant 300 : i32
    %188 = vector.broadcast %c300_i32 : i32 to vector<16x300xi32>
    %189 = arith.select %187, %183, %188 : vector<16x300xi1>, vector<16x300xi32>
    %cst_122 = arith.constant dense<2147483647> : vector<16xi32>
    %190 = vector.multi_reduction <minsi>, %189, %cst_122 [1] : vector<16x300xi32> to vector<16xi32>
    %191 = vector.shape_cast %190 : vector<16xi32> to vector<16x1xi32>
    %192 = vector.broadcast %191 : vector<16x1xi32> to vector<16x300xi32>
    %193 = arith.cmpi eq, %183, %192 : vector<16x300xi32>
    %194 = arith.extui %193 : vector<16x300xi1> to vector<16x300xi32>
    %195 = arith.sitofp %194 : vector<16x300xi32> to vector<16x300xf32>
    %c0_123 = arith.constant 0 : index
    %c0_124 = arith.constant 0 : index
    %196 = vector.load %arg18[%c0_123, %c0_124] : memref<16x300xf32, #tpu.memory_space<vmem>>, vector<16x300xf32>
    tpu.vector_store %arg18[%c0_123, %c0_124], %195 {strides = array<i32>} : memref<16x300xf32, #tpu.memory_space<vmem>>, vector<16x300xf32>,
    return
  }
  func.func @transform_0(%arg0: i32) -> (i32, i32) {
    %c0_i32 = arith.constant 0 : i32
    %c0_i32_0 = arith.constant 0 : i32
    return %arg0, %c0_i32 : i32, i32
  }
  func.func @transform_1(%arg0: i32) -> (i32, i32, i32) {
    %c0_i32 = arith.constant 0 : i32
    %c0_i32_0 = arith.constant 0 : i32
    %c0_i32_1 = arith.constant 0 : i32
    %c0_i32_2 = arith.constant 0 : i32
    return %c0_i32, %c0_i32_0, %c0_i32_1 : i32, i32, i32
  }
  func.func @transform_2(%arg0: i32) -> (i32, i32, i32) {
    %c0_i32 = arith.constant 0 : i32
    %c0_i32_0 = arith.constant 0 : i32
    %c0_i32_1 = arith.constant 0 : i32
    %c0_i32_2 = arith.constant 0 : i32
    return %c0_i32, %c0_i32_0, %c0_i32_1 : i32, i32, i32
  }
  func.func @transform_3(%arg0: i32) -> (i32, i32, i32) {
    %c0_i32 = arith.constant 0 : i32
    %c0_i32_0 = arith.constant 0 : i32
    %c0_i32_1 = arith.constant 0 : i32
    %c0_i32_2 = arith.constant 0 : i32
    return %c0_i32, %c0_i32_0, %c0_i32_1 : i32, i32, i32
  }
  func.func @transform_4(%arg0: i32) -> (i32, i32, i32) {
    %c0_i32 = arith.constant 0 : i32
    %c0_i32_0 = arith.constant 0 : i32
    %c0_i32_1 = arith.constant 0 : i32
    %c0_i32_2 = arith.constant 0 : i32
    return %c0_i32, %c0_i32_0, %c0_i32_1 : i32, i32, i32
  }
  func.func @transform_5(%arg0: i32) -> (i32, i32, i32) {
    %c0_i32 = arith.constant 0 : i32
    %c0_i32_0 = arith.constant 0 : i32
    %c0_i32_1 = arith.constant 0 : i32
    %c0_i32_2 = arith.constant 0 : i32
    return %c0_i32, %c0_i32_0, %c0_i32_1 : i32, i32, i32
  }
  func.func @transform_6(%arg0: i32) -> (i32, i32, i32) {
    %c0_i32 = arith.constant 0 : i32
    %c0_i32_0 = arith.constant 0 : i32
    %c0_i32_1 = arith.constant 0 : i32
    %c0_i32_2 = arith.constant 0 : i32
    return %c0_i32, %c0_i32_0, %c0_i32_1 : i32, i32, i32
  }
  func.func @transform_7(%arg0: i32) -> (i32, i32, i32) {
    %c0_i32 = arith.constant 0 : i32
    %c0_i32_0 = arith.constant 0 : i32
    %c0_i32_1 = arith.constant 0 : i32
    %c0_i32_2 = arith.constant 0 : i32
    return %c0_i32, %c0_i32_0, %c0_i32_1 : i32, i32, i32
  }
  func.func @transform_8(%arg0: i32) -> (i32, i32, i32) {
    %c0_i32 = arith.constant 0 : i32
    %c0_i32_0 = arith.constant 0 : i32
    %c0_i32_1 = arith.constant 0 : i32
    %c0_i32_2 = arith.constant 0 : i32
    return %c0_i32, %c0_i32_0, %c0_i32_1 : i32, i32, i32
  }
  func.func @transform_9(%arg0: i32) -> (i32, i32) {
    %c0_i32 = arith.constant 0 : i32
    %c0_i32_0 = arith.constant 0 : i32
    %c0_i32_1 = arith.constant 0 : i32
    return %c0_i32, %c0_i32_0 : i32, i32
  }
  func.func @transform_10(%arg0: i32) -> (i32, i32) {
    %c0_i32 = arith.constant 0 : i32
    %c0_i32_0 = arith.constant 0 : i32
    %c0_i32_1 = arith.constant 0 : i32
    return %c0_i32, %c0_i32_0 : i32, i32
  }
  func.func @transform_11(%arg0: i32) -> (i32, i32) {
    %c0_i32 = arith.constant 0 : i32
    %c0_i32_0 = arith.constant 0 : i32
    %c0_i32_1 = arith.constant 0 : i32
    return %c0_i32, %c0_i32_0 : i32, i32
  }
  func.func @transform_12(%arg0: i32) -> (i32, i32) {
    %c0_i32 = arith.constant 0 : i32
    %c0_i32_0 = arith.constant 0 : i32
    %c0_i32_1 = arith.constant 0 : i32
    return %c0_i32, %c0_i32_0 : i32, i32
  }
  func.func @transform_13(%arg0: i32) -> (i32, i32) {
    %c0_i32 = arith.constant 0 : i32
    %c0_i32_0 = arith.constant 0 : i32
    %c0_i32_1 = arith.constant 0 : i32
    return %c0_i32, %c0_i32_0 : i32, i32
  }
  func.func @transform_14(%arg0: i32) -> (i32, i32) {
    %c0_i32 = arith.constant 0 : i32
    %c0_i32_0 = arith.constant 0 : i32
    %c0_i32_1 = arith.constant 0 : i32
    return %c0_i32, %c0_i32_0 : i32, i32
  }
  func.func @transform_15(%arg0: i32) -> (i32, i32) {
    %c0_i32 = arith.constant 0 : i32
    %c0_i32_0 = arith.constant 0 : i32
    return %arg0, %c0_i32 : i32, i32
  }
  func.func @transform_16(%arg0: i32) -> (i32, i32) {
    %c0_i32 = arith.constant 0 : i32
    %c0_i32_0 = arith.constant 0 : i32
    return %arg0, %c0_i32 : i32, i32
  }
  func.func @transform_17(%arg0: i32) -> (i32, i32) {
    %c0_i32 = arith.constant 0 : i32
    %c0_i32_0 = arith.constant 0 : i32
    return %arg0, %c0_i32 : i32, i32
  }
}

</mosaic_0001>

<bundles_post_ra>
// kernel: tpu_custom_call.1
= control target key start
LH: loop header
LB: loop body
LE: loop exit
PB: predicated region body
PF: predicated region fallthrough
CT: control target
= control target key end

     0   :  { %s2721_s0 = inlined_call_operand.hbm [shape: f32[16,64], index: 0, kind: input, shape index: {}]   ;;  %s2722_s1 = inlined_call_operand.vmem [shape: f32[3,64,64], index: 1, kind: input, shape index: {}]   ;;  %s2723_s2 = inlined_call_operand.vmem [shape: f32[3,1,64], index: 2, kind: input, shape index: {}]   ;;  %s2724_s3 = inlined_call_operand.vmem [shape: f32[3,64,64], index: 3, kind: input, shape index: {}]   ;;  %s2725_s4 = inlined_call_operand.vmem [shape: f32[3,1,64], index: 4, kind: input, shape index: {}]   ;;  %s2726_s5 = inlined_call_operand.vmem [shape: f32[3,64,64], index: 5, kind: input, shape index: {}]   ;;  %s2727_s6 = inlined_call_operand.hbm [shape: f32[3,1,64], index: 6, kind: input, shape index: {}]   ;;  %s2728_s7 = inlined_call_operand.hbm [shape: f32[3,64,64], index: 7, kind: input, shape index: {}]   ;;  %s2729_s8 = inlined_call_operand.vmem [shape: f32[3,1,64], index: 8, kind: input, shape index: {}]   ;;  %s2730_s9 = inlined_call_operand.vmem [shape: f32[64,64], index: 9, kind: input, shape index: {}]   ;;  %s2731_s10 = inlined_call_operand.vmem [shape: f32[1,64], index: 10, kind: input, shape index: {}]   ;;  %s2732_s11 = inlined_call_operand.vmem [shape: f32[64,128], index: 11, kind: input, shape index: {}]   ;;  %s2733_s12 = inlined_call_operand.vmem [shape: f32[1,128], index: 12, kind: input, shape index: {}]   ;;  %s2734_s13 = inlined_call_operand.vmem [shape: f32[128,300], index: 13, kind: input, shape index: {}]   ;;  %s2735_s14 = inlined_call_operand.vmem [shape: f32[1,300], index: 14, kind: input, shape index: {}]   ;;  %s2736_s15 = inlined_call_operand.hbm [shape: f32[16,300], index: 15, kind: input, shape index: {}]   ;;  %s2737_s16 = inlined_call_operand.hbm [shape: f32[16,192], index: 16, kind: output, shape index: {0}]   ;;  %s2738_s17 = inlined_call_operand.hbm [shape: f32[16,300], index: 17, kind: output, shape index: {1}]  }
   0x1   :  { %2743 = sst [smem:[#allocation18_spill]] %s2721_s0 }
   0x2   :  { %2744 = sst [smem:[#allocation19_spill]] %s2722_s1 }
   0x3   :  { %2745 = sst [smem:[#allocation20_spill]] %s2738_s17 }
   0x4   :  { %23 = vsyncpa [#allocation3], 0 }
   0x5   :  { %24 = vsyncpa [#allocation6], 0 }
   0x6   :  { %25 = vsyncpa [#allocation9], 0 }
   0x7   :  { %26 = vsyncpa [#allocation4], 0 }
   0x8   :  { %27 = vsyncpa [#allocation12], 0  ;;  %s1906_s24 = smov [#allocation5]   ;;  %s1764_s28 = scalar_lea.hbm %s2727_s6, 48 }
   0x9   :  { %s55_s25 = sshll.u32 %s1906_s24, 4  ;;  %p1765_p0 = scmp.ne.s32.totalorder %s2727_s6, %s1764_s28  ;;  %s56_s25 = int_to_ptr.vmem [resolvable:$true] %s55_s25 }
   0xa   :  { %p1768_p1 = scmp.lt.u32.totalorder %s1764_s28, %s2727_s6 }
   0xc   :  { %p1770_p2 = pnand %p1768_p1, %p1765_p0 }
   0xe   :  { %1773 = shalt.err (!%p1770_p2)
}
   0xf   :  { %s1774_s19 = scalar_lea.vmem %s56_s25, 48  ;;  %s1778_s1 = scalar_lea.vmem %s56_s25, 64 }
  0x10   :  { %p1775_p3 = scmp.ne.s32.totalorder %s56_s25, %s1774_s19  ;;  %p1779_p4 = scmp.lt.s32.totalorder %s56_s25, %s56_s25 }
  0x11   :  { %p1780_p5 = scmp.lt.s32.totalorder %s1778_s1, %s1774_s19 }
  0x13   :  { %p1781_p6 = por %p1780_p5, %p1779_p4 }
  0x15   :  { %p1782_p7 = pnand %p1781_p6, %p1775_p3 }
  0x17   :  { %1785 = shalt.err (!%p1782_p7)
}
  0x18   :  { %s2742_s20 = smov 16   ;;  %s1908_s21 = smov 1  }
  0x19   :  { %61 = dma.hbm_to_vmem [thread:$0]  %s2727_s6, 48, %s56_s25, [#allocation6], %s2742_s20, %s2742_s20, %s1908_s21  }
  0x1a   :  { %s1909_s24 = smov [#allocation2]   ;;  %s2746_s29 = sld [smem:[#allocation18_spill]] }
  0x1b   :  { %s33_s26 = sshll.u32 %s1909_s24, 4  ;;  %s34_s26 = int_to_ptr.vmem [resolvable:$true] %s33_s26 }
  0x20   :  { %s1786_s0 = scalar_lea.hbm %s2746_s29, 256 }
  0x21   :  { %p1787_p8 = scmp.ne.s32.totalorder %s2746_s29, %s1786_s0  ;;  %p1790_p9 = scmp.lt.u32.totalorder %s1786_s0, %s2746_s29 }
  0x23   :  { %p1792_p10 = pnand %p1790_p9, %p1787_p8 }
  0x25   :  { %1795 = shalt.err (!%p1792_p10)
}
  0x26   :  { %s1796_s17 = scalar_lea.vmem %s34_s26, 256  ;;  %p1801_p12 = scmp.lt.s32.totalorder %s34_s26, %s34_s26 }
  0x27   :  { %p1797_p11 = scmp.ne.s32.totalorder %s34_s26, %s1796_s17  ;;  %p1802_p13 = scmp.lt.s32.totalorder %s1796_s17, %s1796_s17 }
  0x29   :  { %p1803_p0 = por %p1802_p13, %p1801_p12 }
  0x2b   :  { %p1804_p1 = pnand %p1803_p0, %p1797_p11 }
  0x2d   :  { %1807 = shalt.err (!%p1804_p1)
}
  0x2e   :  { %s1910_s6 = smov 128   ;;  %s1911_s25 = smov 8  }
  0x2f   :  { %39 = dma.hbm_to_vmem [thread:$0]  %s2746_s29, 256, %s34_s26, [#allocation3], %s1910_s6, %s1910_s6, %s1911_s25  }
  0x30   :  { %s1912_s23 = smov [#allocation7]   ;;  %s1913_s27 = smov [#allocation8]  }
  0x31   :  { %s67_s24 = sshll.u32 %s1912_s23, 4  ;;  %s93_s28 = sshll.u32 %s1913_s27, 4  ;;  %s68_s24 = int_to_ptr.vmem [resolvable:$true] %s67_s24  ;;  %s2039_s28 = int_to_ptr.vmem [resolvable:$true] %s93_s28 }
  0x32   :  { %s1808_s17 = scalar_lea.hbm %s2728_s7, 3072 }
  0x33   :  { %p1809_p2 = scmp.ne.s32.totalorder %s2728_s7, %s1808_s17  ;;  %p1812_p3 = scmp.lt.u32.totalorder %s1808_s17, %s2728_s7 }
  0x35   :  { %p1814_p4 = pnand %p1812_p3, %p1809_p2 }
  0x37   :  { %1817 = shalt.err (!%p1814_p4)
}
  0x38   :  { %s1818_s26 = scalar_lea.vmem %s68_s24, 3072  ;;  %p1823_p6 = scmp.lt.s32.totalorder %s68_s24, %s68_s24 }
  0x39   :  { %p1819_p5 = scmp.ne.s32.totalorder %s68_s24, %s1818_s26  ;;  %p1824_p7 = scmp.lt.s32.totalorder %s1818_s26, %s1818_s26 }
  0x3b   :  { %p1825_p8 = por %p1824_p7, %p1823_p6 }
  0x3d   :  { %p1826_p9 = pnand %p1825_p8, %p1819_p5 }
  0x3f   :  { %1829 = shalt.err (!%p1826_p9)
}
  0x40   :  { %73 = dma.hbm_to_vmem [thread:$0]  %s2728_s7, 3072, %s68_s24, [#allocation6], %s1910_s6, %s1910_s6, %s1911_s25  }
  0x41   :  { %s1830_s27 = scalar_lea.hbm %s2736_s15, 768 }
  0x42   :  { %p1831_p10 = scmp.ne.s32.totalorder %s2736_s15, %s1830_s27  ;;  %p1834_p11 = scmp.lt.u32.totalorder %s1830_s27, %s2736_s15 }
  0x44   :  { %p1836_p12 = pnand %p1834_p11, %p1831_p10 }
  0x46   :  { %1839 = shalt.err (!%p1836_p12)
}
  0x47   :  { %s1840_s18 = scalar_lea.vmem %s2039_s28, 768  ;;  %p1845_p0 = scmp.lt.s32.totalorder %s2039_s28, %s2039_s28 }
  0x48   :  { %p1841_p13 = scmp.ne.s32.totalorder %s2039_s28, %s1840_s18  ;;  %p1846_p1 = scmp.lt.s32.totalorder %s1840_s18, %s1840_s18 }
  0x4a   :  { %p1847_p2 = por %p1846_p1, %p1845_p0 }
  0x4c   :  { %p1848_p3 = pnand %p1847_p2, %p1841_p13 }
  0x4e   :  { %1851 = shalt.err (!%p1848_p3)
}
  0x4f   :  { %s1914_s7 = smov 384   ;;  %s1915_s6 = smov 24  }
  0x50   :  { %99 = dma.hbm_to_vmem [thread:$0]  %s2736_s15, 768, %s2039_s28, [#allocation9], %s1914_s7, %s1914_s7, %s1915_s6  }
  0x51   :  { %1896 = dma.done.wait [#allocation3], 256  }
  0x52   :  { %1897 = vsyncadd [#allocation3], 4294967040 }
  0x53   :  { %1898 = dma.done.wait [#allocation6], 3120  }
  0x54   :  { %1899 = vsyncadd [#allocation6], 4294964176 }
  0x55   :  { %1900 = dma.done.wait [#allocation9], 768  }
  0x56   :  { %1901 = vsyncadd [#allocation9], 4294966528  ;;  %v1916_v0 = vmov 0.0   ;;  %vm1917_vm0 = vmmov 0   ;;  %s2747_s28 = sld [smem:[#allocation19_spill]]  ;;  %v186_v8 = vld [vmem:[%s2724_s3] sm:$0xff] }
  0x57   :  { %1559 = vmatprep.subr.bf16.mxu0 %v1916_v0  ;;  %1567 = vmatprep.mubr.msk.bf16.mxu0 %vm1917_vm0, %v1916_v0  ;;  %v187_v9 = vld [vmem:[%s2724_s3 + $0x8] sm:$0xff]  ;;  %v188_v12 = vld [vmem:[%s2724_s3 + $0x10] sm:$0xff]  ;;  %v189_v13 = vld [vmem:[%s2724_s3 + $0x18] sm:$0xff]  ;;  %vm135_vm1 = vcmask 523264   ;;  %s1919_s26 = smov 64  }
  0x58   :  { %1571 = vmatprep.subr.bf16.mxu1 %v1916_v0  ;;  %1579 = vmatprep.mubr.msk.bf16.mxu1 %vm1917_vm0, %v1916_v0  ;;  %v196_v11 = vpack.c.bf16 %v187_v9, %v186_v8  ;;  %v197_v14 = vpack.c.bf16 %v189_v13, %v188_v12  ;;  %v113_v19 = vld [vmem:[#allocation2] sm:$0xff]  ;;  %v114_v20 = vld [vmem:[#allocation2 + $0x8] sm:$0xff]  ;;  %v192_v25 = vld [vmem:[%s2724_s3 + $0x30] sm:$0xff] }
  0x59   :  { %v2120_v21 = vpack.c.bf16 %v114_v20, %v113_v19  ;;  %v190_v22 = vld [vmem:[%s2724_s3 + $0x20] sm:$0xff]  ;;  %v191_v23 = vld [vmem:[%s2724_s3 + $0x28] sm:$0xff]  ;;  %v193_v26 = vld [vmem:[%s2724_s3 + $0x38] sm:$0xff] }
  0x5a   :  { %1572 = vmatpush3.bf16.msra.mxu1 %v196_v11  ;;  %v198_v24 = vpack.c.bf16 %v191_v23, %v190_v22  ;;  %v199_v27 = vpack.c.bf16 %v193_v26, %v192_v25  ;;  %v256_v28 = vld [vmem:[%s2726_s5] sm:$0xff]  ;;  %v257_v29 = vld [vmem:[%s2726_s5 + $0x8] sm:$0xff]  ;;  %v258_v30 = vld [vmem:[%s2726_s5 + $0x10] sm:$0xff] }
  0x5b   :  { %1573 = vmatprep.subr.bf16.mxu1 %v1916_v0  ;;  %v266_v31 = vpack.c.bf16 %v257_v29, %v256_v28  ;;  %v259_v32 = vld [vmem:[%s2726_s5 + $0x18] sm:$0xff]  ;;  %v1392_v34 = vld [vmem:[%s2723_s2] ss:$0 sm:$0xff]  ;;  %v261_v47 = vld [vmem:[%s2726_s5 + $0x28] sm:$0xff] }
  0x5c   :  { %v115_v1 = vld [vmem:[%s2747_s28] sm:$0xff]  ;;  %v116_v2 = vld [vmem:[%s2747_s28 + $0x8] sm:$0xff]  ;;  %v117_v3 = vld [vmem:[%s2747_s28 + $0x10] sm:$0xff]  ;;  %v267_v33 = vpack.c.bf16 %v259_v32, %v258_v30 }
  0x5d   :  { %v125_v4 = vpack.c.bf16 %v116_v2, %v115_v1  ;;  %v118_v5 = vld [vmem:[%s2747_s28 + $0x18] sm:$0xff]  ;;  %v119_v7 = vld [vmem:[%s2747_s28 + $0x20] sm:$0xff]  ;;  %v120_v10 = vld [vmem:[%s2747_s28 + $0x28] sm:$0xff] }
  0x5e   :  { %v126_v6 = vpack.c.bf16 %v118_v5, %v117_v3  ;;  %v127_v15 = vpack.c.bf16 %v120_v10, %v119_v7  ;;  %v121_v16 = vld [vmem:[%s2747_s28 + $0x30] sm:$0xff]  ;;  %v122_v17 = vld [vmem:[%s2747_s28 + $0x38] sm:$0xff]  ;;  %1574 = vmatpush3.bf16.msra.mxu1 %v197_v14  ;;  %v260_v46 = vld [vmem:[%s2726_s5 + $0x20] sm:$0xff] }
  0x5f   :  { %1560 = vmatpush3.bf16.msra.mxu0 %v125_v4  ;;  %v128_v18 = vpack.c.bf16 %v122_v17, %v121_v16  ;;  %1575 = vmatprep.subr.bf16.mxu1 %v1916_v0  ;;  %v268_v48 = vpack.c.bf16 %v261_v47, %v260_v46  ;;  %v262_v49 = vld [vmem:[%s2726_s5 + $0x30] sm:$0xff]  ;;  %v263_v50 = vld [vmem:[%s2726_s5 + $0x38] sm:$0xff]  ;;  %v328_v54 = vld [vmem:[#allocation7 + $0x10] sm:$0xff] }
  0x60   :  { %1561 = vmatprep.subr.bf16.mxu0 %v1916_v0  ;;  %v269_v51 = vpack.c.bf16 %v263_v50, %v262_v49  ;;  %v326_v52 = vld [vmem:[#allocation7] sm:$0xff]  ;;  %v327_v53 = vld [vmem:[#allocation7 + $0x8] sm:$0xff]  ;;  %v329_v56 = vld [vmem:[#allocation7 + $0x18] sm:$0xff] }
  0x61   :  { %v336_v55 = vpack.c.bf16 %v327_v53, %v326_v52  ;;  %v337_v57 = vpack.c.bf16 %v329_v56, %v328_v54  ;;  %v1394_v58 = vld [vmem:[%s2725_s4] ss:$0 sm:$0xff]  ;;  %v1401_v4 = vld [vmem:[%s2747_s28 + $0x48] sm:$0xff]  ;;  %v1402_v10 = vld [vmem:[%s2747_s28 + $0x50] sm:$0xff] }
  0x62   :  { %1576 = vmatpush3.bf16.msra.mxu1 %v198_v24  ;;  %v1400_v3 = vld [vmem:[%s2747_s28 + $0x40] sm:$0xff]  ;;  %v1403_v11 = vld [vmem:[%s2747_s28 + $0x58] sm:$0xff]  ;;  %v1405_v14 = vld [vmem:[%s2747_s28 + $0x68] sm:$0xff] }
  0x63   :  { %1562 = vmatpush3.bf16.msra.mxu0 %v126_v6  ;;  %1577 = vmatprep.subr.bf16.mxu1 %v1916_v0  ;;  %v401_v8 = vpack.c.bf16 %v1401_v4, %v1400_v3  ;;  %v402_v12 = vpack.c.bf16 %v1403_v11, %v1402_v10  ;;  %v1404_v13 = vld [vmem:[%s2747_s28 + $0x60] sm:$0xff]  ;;  %v1406_v16 = vld [vmem:[%s2747_s28 + $0x70] sm:$0xff]  ;;  %v1407_v17 = vld [vmem:[%s2747_s28 + $0x78] sm:$0xff] }
  0x64   :  { %1563 = vmatprep.subr.bf16.mxu0 %v1916_v0  ;;  %v330_v19 = vld [vmem:[#allocation7 + $0x20] sm:$0xff]  ;;  %v331_v20 = vld [vmem:[#allocation7 + $0x28] sm:$0xff]  ;;  %v332_v23 = vld [vmem:[#allocation7 + $0x30] sm:$0xff] }
  0x65   :  { %v338_v22 = vpack.c.bf16 %v331_v20, %v330_v19  ;;  %v333_v24 = vld [vmem:[#allocation7 + $0x38] sm:$0xff]  ;;  %v1409_v46 = vld [vmem:[%s2723_s2 + $0x1] ss:$0 sm:$0xff]  ;;  %v1418_v50 = vld [vmem:[%s2724_s3 + $0x78] sm:$0xff] }
  0x66   :  { %1578 = vmatpush3.bf16.msra.mxu1 %v199_v27  ;;  %v339_v25 = vpack.c.bf16 %v333_v24, %v332_v23  ;;  %v1396_v26 = vld [vmem:[#allocation5] ss:$0 sm:$0xff]  ;;  %v1425_v3 = vld [vmem:[%s2726_s5 + $0x58] sm:$0xff] }
  0x67   :  { %1564 = vmatpush3.bf16.msra.mxu0 %v127_v15  ;;  %1595 = vmatprep.subr.bf16.mxu1 %v1916_v0  ;;  %v403_v15 = vpack.c.bf16 %v1405_v14, %v1404_v13  ;;  %v1417_v49 = vld [vmem:[%s2724_s3 + $0x70] sm:$0xff]  ;;  %v605_v13 = vld [vmem:[#allocation7 + $0x50] sm:$0xff] }
  0x68   :  { %1565 = vmatprep.subr.bf16.mxu0 %v1916_v0  ;;  %v603_v11 = vld [vmem:[#allocation7 + $0x40] sm:$0xff] }
  0x6b   :  { %1566 = vmatpush3.bf16.msra.mxu0 %v128_v18  ;;  %v404_v18 = vpack.c.bf16 %v1407_v17, %v1406_v16 }
  0x6c   :  { %1583 = vmatprep.subr.bf16.mxu0 %v1916_v0 }
  0x6e   :  { %1568 = vmatmul.mubr.msk.bf16.vlgmr.msra.gmra.mrb[0].mxu0 %vm135_vm1, %v2120_v21 }
  0x6f   :  { %1591 = vmatprep.mubr.msk.bf16.mxu0 %vm1917_vm0, %v1916_v0  ;;  %1584 = vmatpush3.bf16.msra.mxu0 %v266_v31 }
  0x70   :  { %1585 = vmatprep.subr.bf16.mxu0 %v1916_v0 }
  0x73   :  { %1586 = vmatpush3.bf16.msra.mxu0 %v267_v33 }
  0x74   :  { %1587 = vmatprep.subr.bf16.mxu0 %v1916_v0 }
  0x77   :  { %1588 = vmatpush3.bf16.msra.mxu0 %v268_v48 }
  0x78   :  { %1589 = vmatprep.subr.bf16.mxu0 %v1916_v0 }
  0x7b   :  { %1590 = vmatpush3.bf16.msra.mxu0 %v269_v51 }
  0x7c   :  { %1607 = vmatprep.subr.bf16.mxu0 %v1916_v0 }
 0x141   :  { %v173_v35 = vpop.f32.mrb[0].mxu0 }
 0x142   :  { %v174_v36 = vadd.f32 %v1392_v34, %v173_v35  ;;  %v1569_v37 = vpop.f32.mrb[1].mxu0  ;;  %v1412_v35 = vld [vmem:[%s2724_s3 + $0x48] sm:$0xff] }
 0x143   :  { %v176_v38 = vpop.f32.mrb[2].mxu0 }
 0x144   :  { %v182_v39 = vmul.f32 0.01, %v174_v36  ;;  %v177_v40 = vadd.f32 %v1392_v34, %v176_v38  ;;  %v1570_v41 = vpop.f32.mrb[3].mxu0  ;;  %vm180_vm2 = vcmp.gt.f32.partialorder %v174_v36, 0.0  ;;  %v1411_v34 = vld [vmem:[%s2724_s3 + $0x40] sm:$0xff] }
 0x145   :  { %v1413_v41 = vld [vmem:[%s2724_s3 + $0x50] sm:$0xff] }
 0x146   :  { %vm181_vm3 = vcmp.gt.f32.partialorder %v177_v40, 0.0  ;;  %v183_v42 = vmul.f32 0.01, %v177_v40  ;;  %v184_v43 = vsel %vm180_vm2, %v174_v36, %v182_v39  ;;  %v470_v39 = vpack.c.bf16 %v1412_v35, %v1411_v34 }
 0x148   :  { %v185_v44 = vsel %vm181_vm3, %v177_v40, %v183_v42  ;;  %v1414_v42 = vld [vmem:[%s2724_s3 + $0x58] sm:$0xff] }
 0x149   :  { %v195_v45 = vpack.c.bf16 %v185_v44, %v184_v43  ;;  %v471_v43 = vpack.c.bf16 %v1414_v42, %v1413_v41  ;;  %v1415_v44 = vld [vmem:[%s2724_s3 + $0x60] sm:$0xff]  ;;  %v1440_v41 = vld [vmem:[%s2747_s28 + $0xa8] sm:$0xff] }
 0x14b   :  { %1580 = vmatmul.mubr.msk.bf16.vlgmr.msra.gmra.mrb[0].mxu1 %vm135_vm1, %v195_v45  ;;  %v1416_v45 = vld [vmem:[%s2724_s3 + $0x68] sm:$0xff] }
 0x14c   :  { %1603 = vmatprep.mubr.msk.bf16.mxu1 %vm1917_vm0, %v1916_v0  ;;  %1596 = vmatpush3.bf16.msra.mxu1 %v336_v55  ;;  %v472_v47 = vpack.c.bf16 %v1416_v45, %v1415_v44  ;;  %v1442_v44 = vld [vmem:[%s2747_s28 + $0xb8] sm:$0xff] }
 0x14d   :  { %1597 = vmatprep.subr.bf16.mxu1 %v1916_v0 }
 0x150   :  { %1598 = vmatpush3.bf16.msra.mxu1 %v337_v57  ;;  %v473_v57 = vpack.c.bf16 %v1418_v50, %v1417_v49  ;;  %v609_v49 = vld [vmem:[#allocation7 + $0x70] sm:$0xff]  ;;  %v610_v50 = vld [vmem:[#allocation7 + $0x78] sm:$0xff] }
 0x151   :  { %1599 = vmatprep.subr.bf16.mxu1 %v1916_v0 }
 0x154   :  { %1600 = vmatpush3.bf16.msra.mxu1 %v338_v22  ;;  %v1420_v22 = vld [vmem:[%s2725_s4 + $0x1] ss:$0 sm:$0xff] }
 0x155   :  { %1601 = vmatprep.subr.bf16.mxu1 %v1916_v0 }
 0x158   :  { %1602 = vmatpush3.bf16.msra.mxu1 %v339_v25 }
 0x159   :  { %1619 = vmatprep.subr.bf16.mxu1 %v1916_v0 }
 0x21e   :  { %v243_v59 = vpop.f32.mrb[0].mxu1 }
 0x21f   :  { %v244_v60 = vadd.f32 %v1394_v58, %v243_v59  ;;  %v1581_v61 = vpop.f32.mrb[1].mxu1 }
 0x220   :  { %v246_v62 = vpop.f32.mrb[2].mxu1 }
 0x221   :  { %v252_v63 = vmul.f32 0.01, %v244_v60  ;;  %v247_v1 = vadd.f32 %v1394_v58, %v246_v62  ;;  %v1582_v2 = vpop.f32.mrb[3].mxu1  ;;  %vm250_vm4 = vcmp.gt.f32.partialorder %v244_v60, 0.0  ;;  %v1422_v62 = vld [vmem:[%s2726_s5 + $0x40] sm:$0xff] }
 0x223   :  { %vm251_vm5 = vcmp.gt.f32.partialorder %v247_v1, 0.0  ;;  %v253_v5 = vmul.f32 0.01, %v247_v1  ;;  %v254_v6 = vsel %vm250_vm4, %v244_v60, %v252_v63  ;;  %v1423_v63 = vld [vmem:[%s2726_s5 + $0x48] sm:$0xff] }
 0x224   :  { %v542_v2 = vpack.c.bf16 %v1423_v63, %v1422_v62 }
 0x225   :  { %v255_v7 = vsel %vm251_vm5, %v247_v1, %v253_v5  ;;  %v1424_v1 = vld [vmem:[%s2726_s5 + $0x50] sm:$0xff]  ;;  %v1426_v5 = vld [vmem:[%s2726_s5 + $0x60] sm:$0xff] }
 0x226   :  { %v265_v9 = vpack.c.bf16 %v255_v7, %v254_v6  ;;  %v543_v4 = vpack.c.bf16 %v1425_v3, %v1424_v1  ;;  %v1427_v6 = vld [vmem:[%s2726_s5 + $0x68] sm:$0xff] }
 0x227   :  { %v544_v7 = vpack.c.bf16 %v1427_v6, %v1426_v5  ;;  %v1449_v5 = vld [vmem:[%s2724_s3 + $0x98] sm:$0xff] }
 0x228   :  { %1592 = vmatmul.mubr.msk.bf16.vlgmr.msra.gmra.mrb[4].mxu0 %vm135_vm1, %v265_v9  ;;  %v1429_v9 = vld [vmem:[%s2726_s5 + $0x78] sm:$0xff] }
 0x229   :  { %1608 = vmatpush3.bf16.msra.mxu0 %v401_v8  ;;  %1615 = vmatprep.mubr.msk.bf16.mxu0 %vm1917_vm0, %v1916_v0  ;;  %v1428_v8 = vld [vmem:[%s2726_s5 + $0x70] sm:$0xff] }
 0x22a   :  { %1609 = vmatprep.subr.bf16.mxu0 %v1916_v0  ;;  %v545_v10 = vpack.c.bf16 %v1429_v9, %v1428_v8  ;;  %v1451_v8 = vld [vmem:[%s2724_s3 + $0xa8] sm:$0xff]  ;;  %v1444_v9 = vld [vmem:[%s2723_s2 + $0x2] ss:$0 sm:$0xff] }
 0x22d   :  { %1610 = vmatpush3.bf16.msra.mxu0 %v402_v12  ;;  %v604_v12 = vld [vmem:[#allocation7 + $0x48] sm:$0xff] }
 0x22e   :  { %1611 = vmatprep.subr.bf16.mxu0 %v1916_v0  ;;  %v614_v14 = vpack.c.bf16 %v604_v12, %v603_v11  ;;  %v1452_v12 = vld [vmem:[%s2724_s3 + $0xb0] sm:$0xff] }
 0x231   :  { %1612 = vmatpush3.bf16.msra.mxu0 %v403_v15  ;;  %v606_v15 = vld [vmem:[#allocation7 + $0x58] sm:$0xff] }
 0x232   :  { %1613 = vmatprep.subr.bf16.mxu0 %v1916_v0  ;;  %v615_v16 = vpack.c.bf16 %v606_v15, %v605_v13  ;;  %v1453_v13 = vld [vmem:[%s2724_s3 + $0xb8] sm:$0xff] }
 0x235   :  { %1614 = vmatpush3.bf16.msra.mxu0 %v404_v18 }
 0x236   :  { %1631 = vmatprep.subr.bf16.mxu0 %v1916_v0 }
 0x238   :  { %1616 = vmatmul.mubr.msk.bf16.vlgmr.msra.gmra.mrb[8].mxu0 %vm135_vm1, %v2120_v21 }
 0x239   :  { %1639 = vmatprep.mubr.msk.bf16.mxu0 %vm1917_vm0, %v1916_v0  ;;  %1632 = vmatpush3.bf16.msra.mxu0 %v542_v2 }
 0x23a   :  { %1633 = vmatprep.subr.bf16.mxu0 %v1916_v0 }
 0x23d   :  { %1634 = vmatpush3.bf16.msra.mxu0 %v543_v4  ;;  %v1448_v4 = vld [vmem:[%s2724_s3 + $0x90] sm:$0xff] }
 0x23e   :  { %1635 = vmatprep.subr.bf16.mxu0 %v1916_v0  ;;  %v743_v6 = vpack.c.bf16 %v1449_v5, %v1448_v4  ;;  %v960_v4 = vld [vmem:[%s2730_s9 + $0x30] sm:$0xff]  ;;  %v961_v5 = vld [vmem:[%s2730_s9 + $0x38] sm:$0xff] }
 0x241   :  { %1636 = vmatpush3.bf16.msra.mxu0 %v544_v7  ;;  %v1450_v7 = vld [vmem:[%s2724_s3 + $0xa0] sm:$0xff] }
 0x242   :  { %1637 = vmatprep.subr.bf16.mxu0 %v1916_v0 }
 0x245   :  { %1638 = vmatpush3.bf16.msra.mxu0 %v545_v10  ;;  %v744_v10 = vpack.c.bf16 %v1451_v8, %v1450_v7  ;;  %v879_v7 = vld [vmem:[#allocation7 + $0xa0] sm:$0xff]  ;;  %v880_v8 = vld [vmem:[#allocation7 + $0xa8] sm:$0xff] }
 0x246   :  { %1655 = vmatprep.subr.bf16.mxu0 %v1916_v0 }
 0x2fb   :  { %v313_v27 = vpop.f32.mrb[4].mxu0 }
 0x2fc   :  { %v314_v28 = vadd.f32 %v1396_v26, %v313_v27  ;;  %v1593_v29 = vpop.f32.mrb[5].mxu0 }
 0x2fd   :  { %v316_v30 = vpop.f32.mrb[6].mxu0 }
 0x2fe   :  { %v322_v31 = vmul.f32 0.01, %v314_v28  ;;  %v317_v32 = vadd.f32 %v1396_v26, %v316_v30  ;;  %v1594_v33 = vpop.f32.mrb[7].mxu0  ;;  %vm320_vm6 = vcmp.gt.f32.partialorder %v314_v28, 0.0  ;;  %v1435_v30 = vld [vmem:[%s2747_s28 + $0x80] sm:$0xff] }
 0x300   :  { %vm321_vm7 = vcmp.gt.f32.partialorder %v317_v32, 0.0  ;;  %v323_v36 = vmul.f32 0.01, %v317_v32  ;;  %v324_v37 = vsel %vm320_vm6, %v314_v28, %v322_v31  ;;  %v1436_v31 = vld [vmem:[%s2747_s28 + $0x88] sm:$0xff] }
 0x301   :  { %v679_v35 = vpack.c.bf16 %v1436_v31, %v1435_v30  ;;  %v1461_v30 = vld [vmem:[%s2726_s5 + $0xa0] sm:$0xff]  ;;  %v1462_v31 = vld [vmem:[%s2726_s5 + $0xa8] sm:$0xff] }
 0x302   :  { %v325_v38 = vsel %vm321_vm7, %v317_v32, %v323_v36 }
 0x303   :  { %v335_v40 = vpack.c.bf16 %v325_v38, %v324_v37  ;;  %v1437_v37 = vld [vmem:[%s2747_s28 + $0x90] sm:$0xff]  ;;  %v1438_v38 = vld [vmem:[%s2747_s28 + $0x98] sm:$0xff] }
 0x305   :  { %1604 = vmatmul.mubr.msk.bf16.vlgmr.msra.gmra.mrb[4].mxu1 %vm135_vm1, %v335_v40  ;;  %v1439_v40 = vld [vmem:[%s2747_s28 + $0xa0] sm:$0xff] }
 0x306   :  { %1620 = vmatpush3.bf16.msra.mxu1 %v470_v39  ;;  %1627 = vmatprep.mubr.msk.bf16.mxu1 %vm1917_vm0, %v1916_v0  ;;  %v680_v39 = vpack.c.bf16 %v1438_v38, %v1437_v37  ;;  %v681_v42 = vpack.c.bf16 %v1440_v41, %v1439_v40  ;;  %v876_v37 = vld [vmem:[#allocation7 + $0x88] sm:$0xff]  ;;  %v877_v38 = vld [vmem:[#allocation7 + $0x90] sm:$0xff]  ;;  %v878_v40 = vld [vmem:[#allocation7 + $0x98] sm:$0xff] }
 0x307   :  { %1621 = vmatprep.subr.bf16.mxu1 %v1916_v0  ;;  %v887_v41 = vpack.c.bf16 %v878_v40, %v877_v38 }
 0x30a   :  { %1622 = vmatpush3.bf16.msra.mxu1 %v471_v43  ;;  %v1441_v43 = vld [vmem:[%s2747_s28 + $0xb0] sm:$0xff] }
 0x30b   :  { %v445_v48 = vpop.f32.mrb[8].mxu0  ;;  %1623 = vmatprep.subr.bf16.mxu1 %v1916_v0  ;;  %v682_v45 = vpack.c.bf16 %v1442_v44, %v1441_v43 }
 0x30c   :  { %v446_v51 = vadd.f32 %v1409_v46, %v445_v48  ;;  %v1617_v52 = vpop.f32.mrb[9].mxu0 }
 0x30d   :  { %v448_v53 = vpop.f32.mrb[10].mxu0  ;;  %v1430_v52 = vld [vmem:[#allocation5 + $0x1] ss:$0 sm:$0xff] }
 0x30e   :  { %v454_v54 = vmul.f32 0.01, %v446_v51  ;;  %v449_v55 = vadd.f32 %v1409_v46, %v448_v53  ;;  %v1618_v56 = vpop.f32.mrb[11].mxu0  ;;  %1624 = vmatpush3.bf16.msra.mxu1 %v472_v47  ;;  %vm452_vm8 = vcmp.gt.f32.partialorder %v446_v51, 0.0  ;;  %v607_v46 = vld [vmem:[#allocation7 + $0x60] sm:$0xff]  ;;  %v608_v47 = vld [vmem:[#allocation7 + $0x68] sm:$0xff] }
 0x30f   :  { %1625 = vmatprep.subr.bf16.mxu1 %v1916_v0  ;;  %v616_v48 = vpack.c.bf16 %v608_v47, %v607_v46  ;;  %v1455_v46 = vld [vmem:[%s2725_s4 + $0x2] ss:$0 sm:$0xff] }
 0x310   :  { %vm453_vm9 = vcmp.gt.f32.partialorder %v449_v55, 0.0  ;;  %v455_v58 = vmul.f32 0.01, %v449_v55  ;;  %v456_v59 = vsel %vm452_vm8, %v446_v51, %v454_v54  ;;  %v617_v51 = vpack.c.bf16 %v610_v50, %v609_v49 }
 0x312   :  { %v457_v60 = vsel %vm453_vm9, %v449_v55, %v455_v58  ;;  %1626 = vmatpush3.bf16.msra.mxu1 %v473_v57 }
 0x313   :  { %v469_v61 = vpack.c.bf16 %v457_v60, %v456_v59  ;;  %1643 = vmatprep.subr.bf16.mxu1 %v1916_v0  ;;  %v1446_v60 = vld [vmem:[%s2724_s3 + $0x80] sm:$0xff] }
 0x315   :  { %1628 = vmatmul.mubr.msk.bf16.vlgmr.msra.gmra.mrb[8].mxu1 %vm135_vm1, %v469_v61  ;;  %v1447_v61 = vld [vmem:[%s2724_s3 + $0x88] sm:$0xff] }
 0x316   :  { %1651 = vmatprep.mubr.msk.bf16.mxu1 %vm1917_vm0, %v1916_v0  ;;  %1644 = vmatpush3.bf16.msra.mxu1 %v614_v14  ;;  %v742_v2 = vpack.c.bf16 %v1447_v61, %v1446_v60  ;;  %v956_v61 = vld [vmem:[%s2730_s9 + $0x10] sm:$0xff] }
 0x317   :  { %1645 = vmatprep.subr.bf16.mxu1 %v1916_v0 }
 0x31a   :  { %1646 = vmatpush3.bf16.msra.mxu1 %v615_v16 }
 0x31b   :  { %1647 = vmatprep.subr.bf16.mxu1 %v1916_v0 }
 0x31e   :  { %1648 = vmatpush3.bf16.msra.mxu1 %v616_v48 }
 0x31f   :  { %1649 = vmatprep.subr.bf16.mxu1 %v1916_v0 }
 0x322   :  { %1650 = vmatpush3.bf16.msra.mxu1 %v617_v51 }
 0x323   :  { %1667 = vmatprep.subr.bf16.mxu1 %v1916_v0 }
 0x3d8   :  { %v2284_v17 = vpop.f32.mrb[4].mxu1 }
 0x3d9   :  { %v1605_v18 = vpop.f32.mrb[5].mxu1 }
 0x3da   :  { %v2286_v19 = vpop.f32.mrb[6].mxu1 }
 0x3db   :  { %v1606_v20 = vpop.f32.mrb[7].mxu1 }
 0x3e8   :  { %v517_v23 = vpop.f32.mrb[8].mxu1 }
 0x3e9   :  { %v518_v24 = vadd.f32 %v1420_v22, %v517_v23  ;;  %v1629_v25 = vpop.f32.mrb[9].mxu1 }
 0x3ea   :  { %v520_v26 = vpop.f32.mrb[10].mxu1  ;;  %v1458_v25 = vld [vmem:[%s2726_s5 + $0x88] sm:$0xff] }
 0x3eb   :  { %v526_v27 = vmul.f32 0.01, %v518_v24  ;;  %v521_v28 = vadd.f32 %v1420_v22, %v520_v26  ;;  %v1630_v29 = vpop.f32.mrb[11].mxu1  ;;  %vm524_vm10 = vcmp.gt.f32.partialorder %v518_v24, 0.0  ;;  %v745_v22 = vpack.c.bf16 %v1453_v13, %v1452_v12  ;;  %v1459_v26 = vld [vmem:[%s2726_s5 + $0x90] sm:$0xff]  ;;  %v1083_v13 = vld [vmem:[%s2734_s13 + $0x8] sm:$0xff] }
 0x3ed   :  { %vm525_vm11 = vcmp.gt.f32.partialorder %v521_v28, 0.0  ;;  %v527_v32 = vmul.f32 0.01, %v521_v28  ;;  %v528_v33 = vsel %vm524_vm10, %v518_v24, %v526_v27  ;;  %v1457_v24 = vld [vmem:[%s2726_s5 + $0x80] sm:$0xff] }
 0x3ee   :  { %v814_v27 = vpack.c.bf16 %v1458_v25, %v1457_v24  ;;  %v1091_v25 = vld [vmem:[%s2734_s13 + $0x48] sm:$0xff] }
 0x3ef   :  { %v529_v34 = vsel %vm525_vm11, %v521_v28, %v527_v32  ;;  %v1460_v28 = vld [vmem:[%s2726_s5 + $0x98] sm:$0xff]  ;;  %v816_v32 = vpack.c.bf16 %v1462_v31, %v1461_v30 }
 0x3f0   :  { %v541_v36 = vpack.c.bf16 %v529_v34, %v528_v33  ;;  %v815_v29 = vpack.c.bf16 %v1460_v28, %v1459_v26  ;;  %v1463_v33 = vld [vmem:[%s2726_s5 + $0xb0] sm:$0xff]  ;;  %v1464_v34 = vld [vmem:[%s2726_s5 + $0xb8] sm:$0xff]  ;;  %s1920_s5 = smov [#allocation10]  }
 0x3f1   :  { %s1362_s22 = sshll.u32 %s1920_s5, 4  ;;  %s2671_s22 = int_to_ptr.vmem [resolvable:$true] %s1362_s22 }
 0x3f2   :  { %1640 = vmatmul.mubr.msk.bf16.vlgmr.msra.gmra.mrb[12].mxu0 %vm135_vm1, %v541_v36  ;;  %v875_v36 = vld [vmem:[#allocation7 + $0x80] sm:$0xff]  ;;  %s1852_s28 = scalar_lea.vmem %s2671_s22, 512  ;;  %p1857_p5 = scmp.lt.s32.totalorder %s2671_s22, %s2671_s22 }
 0x3f3   :  { %1656 = vmatpush3.bf16.msra.mxu0 %v679_v35  ;;  %1663 = vmatprep.mubr.msk.bf16.mxu0 %vm1917_vm0, %v1916_v0  ;;  %v817_v35 = vpack.c.bf16 %v1464_v34, %v1463_v33  ;;  %p1853_p4 = scmp.ne.s32.totalorder %s2671_s22, %s1852_s28  ;;  %p1858_p6 = scmp.lt.s32.totalorder %s1852_s28, %s1852_s28 }
 0x3f4   :  { %1657 = vmatprep.subr.bf16.mxu0 %v1916_v0 }
 0x3f5   :  { %p1859_p7 = por %p1858_p6, %p1857_p5 }
 0x3f7   :  { %1658 = vmatpush3.bf16.msra.mxu0 %v680_v39  ;;  %v886_v39 = vpack.c.bf16 %v876_v37, %v875_v36  ;;  %v1017_v36 = vld [vmem:[%s2732_s11 + $0x8] sm:$0xff]  ;;  %p1860_p8 = pnand %p1859_p7, %p1853_p4 }
 0x3f8   :  { %1659 = vmatprep.subr.bf16.mxu0 %v1916_v0 }
 0x3fb   :  { %1660 = vmatpush3.bf16.msra.mxu0 %v681_v42 }
 0x3fc   :  { %1661 = vmatprep.subr.bf16.mxu0 %v1916_v0 }
 0x3ff   :  { %1662 = vmatpush3.bf16.msra.mxu0 %v682_v45 }
 0x400   :  { %1679 = vmatprep.subr.bf16.mxu0 %v1916_v0 }
 0x402   :  { %1664 = vmatmul.mubr.msk.bf16.vlgmr.msra.gmra.mrb[16].mxu0 %vm135_vm1, %v2120_v21 }
 0x403   :  { %1687 = vmatprep.mubr.msk.bf16.mxu0 %vm1917_vm0, %v1916_v0  ;;  %1680 = vmatpush3.bf16.msra.mxu0 %v814_v27  ;;  %v1465_v27 = vld [vmem:[#allocation5 + $0x2] ss:$0 sm:$0xff] }
 0x404   :  { %1681 = vmatprep.subr.bf16.mxu0 %v1916_v0 }
 0x407   :  { %1682 = vmatpush3.bf16.msra.mxu0 %v815_v29 }
 0x408   :  { %1683 = vmatprep.subr.bf16.mxu0 %v1916_v0 }
 0x40b   :  { %1684 = vmatpush3.bf16.msra.mxu0 %v816_v32 }
 0x40c   :  { %1685 = vmatprep.subr.bf16.mxu0 %v1916_v0 }
 0x40f   :  { %1686 = vmatpush3.bf16.msra.mxu0 %v817_v35  ;;  %v1016_v35 = vld [vmem:[%s2732_s11] sm:$0xff] }
 0x410   :  { %1703 = vmatprep.subr.bf16.mxu0 %v1916_v0  ;;  %v1026_v40 = vpack.c.bf16 %v1017_v36, %v1016_v35  ;;  %v1113_v35 = vld [vmem:[%s2734_s13 + $0xf8] sm:$0xff]  ;;  %v1116_v36 = vld [vmem:[%s2734_s13 + $0x110] sm:$0xff] }
 0x4c5   :  { %v589_v53 = vpop.f32.mrb[12].mxu0 }
 0x4c6   :  { %v590_v54 = vadd.f32 %v1430_v52, %v589_v53  ;;  %v1641_v55 = vpop.f32.mrb[13].mxu0 }
 0x4c7   :  { %v592_v56 = vpop.f32.mrb[14].mxu0  ;;  %v955_v55 = vld [vmem:[%s2730_s9 + $0x8] sm:$0xff] }
 0x4c8   :  { %v598_v57 = vmul.f32 0.01, %v590_v54  ;;  %v593_v58 = vadd.f32 %v1430_v52, %v592_v56  ;;  %v1642_v59 = vpop.f32.mrb[15].mxu0  ;;  %vm596_vm12 = vcmp.gt.f32.partialorder %v590_v54, 0.0 }
 0x4ca   :  { %vm597_vm13 = vcmp.gt.f32.partialorder %v593_v58, 0.0  ;;  %v599_v62 = vmul.f32 0.01, %v593_v58  ;;  %v600_v63 = vsel %vm596_vm12, %v590_v54, %v598_v57  ;;  %v954_v54 = vld [vmem:[%s2730_s9] sm:$0xff] }
 0x4cb   :  { %v963_v59 = vpack.c.bf16 %v955_v55, %v954_v54 }
 0x4cc   :  { %v601_v1 = vsel %vm597_vm13, %v593_v58, %v599_v62  ;;  %v957_v62 = vld [vmem:[%s2730_s9 + $0x18] sm:$0xff] }
 0x4cd   :  { %v613_v3 = vpack.c.bf16 %v601_v1, %v600_v63  ;;  %v964_v63 = vpack.c.bf16 %v957_v62, %v956_v61  ;;  %v958_v1 = vld [vmem:[%s2730_s9 + $0x20] sm:$0xff]  ;;  %v1084_v61 = vld [vmem:[%s2734_s13 + $0x10] sm:$0xff]  ;;  %v1087_v62 = vld [vmem:[%s2734_s13 + $0x28] sm:$0xff] }
 0x4cf   :  { %1652 = vmatmul.mubr.msk.bf16.vlgmr.msra.gmra.mrb[12].mxu1 %vm135_vm1, %v613_v3 }
 0x4d0   :  { %1668 = vmatpush3.bf16.msra.mxu1 %v742_v2  ;;  %1675 = vmatprep.mubr.msk.bf16.mxu1 %vm1917_vm0, %v1916_v0  ;;  %v959_v2 = vld [vmem:[%s2730_s9 + $0x28] sm:$0xff] }
 0x4d1   :  { %1669 = vmatprep.subr.bf16.mxu1 %v1916_v0  ;;  %v965_v3 = vpack.c.bf16 %v959_v2, %v958_v1  ;;  %v1134_v2 = vpack.c.bf16 %v1087_v62, %v1084_v61  ;;  %v1129_v62 = vld [vmem:[%s2734_s13 + $0x178] sm:$0xff] }
 0x4d4   :  { %1670 = vmatpush3.bf16.msra.mxu1 %v743_v6  ;;  %v966_v6 = vpack.c.bf16 %v961_v5, %v960_v4  ;;  %v1093_v4 = vld [vmem:[%s2734_s13 + $0x58] sm:$0xff] }
 0x4d5   :  { %v723_v11 = vpop.f32.mrb[16].mxu0  ;;  %1671 = vmatprep.subr.bf16.mxu1 %v1916_v0 }
 0x4d6   :  { %v724_v14 = vadd.f32 %v1444_v9, %v723_v11  ;;  %v1665_v15 = vpop.f32.mrb[17].mxu0  ;;  %v882_v11 = vld [vmem:[#allocation7 + $0xb8] sm:$0xff] }
 0x4d7   :  { %v726_v16 = vpop.f32.mrb[18].mxu0 }
 0x4d8   :  { %v727_v18 = vadd.f32 %v1444_v9, %v726_v16  ;;  %v1666_v20 = vpop.f32.mrb[19].mxu0  ;;  %1672 = vmatpush3.bf16.msra.mxu1 %v744_v10  ;;  %v888_v9 = vpack.c.bf16 %v880_v8, %v879_v7  ;;  %v881_v10 = vld [vmem:[#allocation7 + $0xb0] sm:$0xff]  ;;  %v1085_v16 = vld [vmem:[%s2734_s13 + $0x18] sm:$0xff] }
 0x4d9   :  { %1673 = vmatprep.subr.bf16.mxu1 %v1916_v0  ;;  %v889_v12 = vpack.c.bf16 %v882_v11, %v881_v10  ;;  %v1089_v20 = vld [vmem:[%s2734_s13 + $0x38] sm:$0xff]  ;;  %v1098_v7 = vld [vmem:[%s2734_s13 + $0x80] sm:$0xff]  ;;  %v1096_v11 = vld [vmem:[%s2734_s13 + $0x70] sm:$0xff] }
 0x4da   :  { %v741_v23 = vpack.c.bf16 %v727_v18, %v724_v14  ;;  %v1082_v14 = vld [vmem:[%s2734_s13] sm:$0xff]  ;;  %v1097_v10 = vld [vmem:[%s2734_s13 + $0x78] sm:$0xff] }
 0x4db   :  { %v1132_v18 = vpack.c.bf16 %v1085_v16, %v1082_v14  ;;  %v1101_v14 = vld [vmem:[%s2734_s13 + $0x98] sm:$0xff] }
 0x4dc   :  { %1674 = vmatpush3.bf16.msra.mxu1 %v745_v22  ;;  %v1092_v22 = vld [vmem:[%s2734_s13 + $0x50] sm:$0xff] }
 0x4dd   :  { %1691 = vmatprep.subr.bf16.mxu1 %v1916_v0  ;;  %v1136_v24 = vpack.c.bf16 %v1092_v22, %v1089_v20  ;;  %v1103_v20 = vld [vmem:[%s2734_s13 + $0xa8] sm:$0xff]  ;;  %v1102_v22 = vld [vmem:[%s2734_s13 + $0xa0] sm:$0xff] }
 0x4df   :  { %1676 = vmatmul.mubr.msk.bf16.vlgmr.msra.gmra.mrb[16].mxu1 %vm135_vm1, %v741_v23  ;;  %v1088_v23 = vld [vmem:[%s2734_s13 + $0x30] sm:$0xff] }
 0x4e0   :  { %1699 = vmatprep.mubr.msk.bf16.mxu1 %vm1917_vm0, %v1916_v0  ;;  %1692 = vmatpush3.bf16.msra.mxu1 %v886_v39  ;;  %v1135_v26 = vpack.c.bf16 %v1091_v25, %v1088_v23 }
 0x4e1   :  { %1693 = vmatprep.subr.bf16.mxu1 %v1916_v0 }
 0x4e4   :  { %1694 = vmatpush3.bf16.msra.mxu1 %v887_v41 }
 0x4e5   :  { %1695 = vmatprep.subr.bf16.mxu1 %v1916_v0 }
 0x4e8   :  { %1696 = vmatpush3.bf16.msra.mxu1 %v888_v9  ;;  %v1094_v9 = vld [vmem:[%s2734_s13 + $0x60] sm:$0xff] }
 0x4e9   :  { %1697 = vmatprep.subr.bf16.mxu1 %v1916_v0 }
 0x4ec   :  { %1698 = vmatpush3.bf16.msra.mxu1 %v889_v12  ;;  %v1138_v12 = vpack.c.bf16 %v1097_v10, %v1094_v9  ;;  %v1472_v9 = vld [vmem:[%s2733_s12] ss:$0 sm:$0xff] }
 0x4ed   :  { %1715 = vmatprep.subr.bf16.mxu1 %v1916_v0 }
 0x5a2   :  { %v2395_v42 = vpop.f32.mrb[12].mxu1 }
 0x5a3   :  { %v1653_v43 = vpop.f32.mrb[13].mxu1 }
 0x5a4   :  { %v2397_v44 = vpop.f32.mrb[14].mxu1  ;;  %v1018_v43 = vld [vmem:[%s2732_s11 + $0x10] sm:$0xff] }
 0x5a5   :  { %v1654_v45 = vpop.f32.mrb[15].mxu1 }
 0x5a6   :  { %v1019_v45 = vld [vmem:[%s2732_s11 + $0x18] sm:$0xff] }
 0x5b2   :  { %v789_v47 = vpop.f32.mrb[16].mxu1 }
 0x5b3   :  { %v790_v48 = vadd.f32 %v1455_v46, %v789_v47  ;;  %v1677_v49 = vpop.f32.mrb[17].mxu1  ;;  %v1020_v47 = vld [vmem:[%s2732_s11 + $0x20] sm:$0xff] }
 0x5b4   :  { %v792_v50 = vpop.f32.mrb[18].mxu1  ;;  %v1470_v49 = vld [vmem:[%s2731_s10] ss:$0 sm:$0xff] }
 0x5b5   :  { %v798_v51 = vmul.f32 0.01, %v790_v48  ;;  %v793_v52 = vadd.f32 %v1455_v46, %v792_v50  ;;  %v1678_v53 = vpop.f32.mrb[19].mxu1  ;;  %vm796_vm14 = vcmp.gt.f32.partialorder %v790_v48, 0.0  ;;  %v1027_v46 = vpack.c.bf16 %v1019_v45, %v1018_v43 }
 0x5b6   :  { %v1023_v53 = vld [vmem:[%s2732_s11 + $0x38] sm:$0xff] }
 0x5b7   :  { %vm797_vm15 = vcmp.gt.f32.partialorder %v793_v52, 0.0  ;;  %v799_v56 = vmul.f32 0.01, %v793_v52  ;;  %v800_v57 = vsel %vm796_vm14, %v790_v48, %v798_v51  ;;  %v1021_v48 = vld [vmem:[%s2732_s11 + $0x28] sm:$0xff] }
 0x5b8   :  { %v1028_v50 = vpack.c.bf16 %v1021_v48, %v1020_v47  ;;  %v1122_v47 = vld [vmem:[%s2734_s13 + $0x140] sm:$0xff] }
 0x5b9   :  { %v801_v58 = vsel %vm797_vm15, %v793_v52, %v799_v56  ;;  %v1022_v52 = vld [vmem:[%s2732_s11 + $0x30] sm:$0xff] }
 0x5ba   :  { %v813_v60 = vpack.c.bf16 %v801_v58, %v800_v57 }
 0x5bc   :  { %1688 = vmatmul.mubr.msk.bf16.vlgmr.msra.gmra.mrb[20].mxu0 %vm135_vm1, %v813_v60  ;;  %v1029_v60 = vpack.c.bf16 %v1023_v53, %v1022_v52  ;;  %v1123_v53 = vld [vmem:[%s2734_s13 + $0x148] sm:$0xff] }
 0x5bd   :  { %1704 = vmatpush3.bf16.msra.mxu0 %v963_v59  ;;  %1711 = vmatprep.mubr.msk.bf16.mxu0 %vm1917_vm0, %v1916_v0 }
 0x5be   :  { %1705 = vmatprep.subr.bf16.mxu0 %v1916_v0 }
 0x5c1   :  { %1706 = vmatpush3.bf16.msra.mxu0 %v964_v63 }
 0x5c2   :  { %1707 = vmatprep.subr.bf16.mxu0 %v1916_v0 }
 0x5c5   :  { %1708 = vmatpush3.bf16.msra.mxu0 %v965_v3  ;;  %v1090_v3 = vld [vmem:[%s2734_s13 + $0x40] sm:$0xff] }
 0x5c6   :  { %1709 = vmatprep.subr.bf16.mxu0 %v1916_v0  ;;  %v1137_v5 = vpack.c.bf16 %v1093_v4, %v1090_v3 }
 0x5c9   :  { %1710 = vmatpush3.bf16.msra.mxu0 %v966_v6  ;;  %v1095_v6 = vld [vmem:[%s2734_s13 + $0x68] sm:$0xff] }
 0x5ca   :  { %v1139_v8 = vpack.c.bf16 %v1098_v7, %v1095_v6 }
 0x5cc   :  { %1712 = vmatmul.mubr.msk.bf16.vlgmr.msra.gmra.mrb[24].mxu0 %vm135_vm1, %v2120_v21  ;;  %v1086_v21 = vld [vmem:[%s2734_s13 + $0x20] sm:$0xff] }
 0x5cd   :  { %v1133_v15 = vpack.c.bf16 %v1086_v21, %v1083_v13  ;;  %v1099_v13 = vld [vmem:[%s2734_s13 + $0x88] sm:$0xff] }
 0x5ce   :  { %v1140_v21 = vpack.c.bf16 %v1099_v13, %v1096_v11 }
 0x5cf   :  { %1172 = vmatprep.subr.bf16.mxu0 %v1133_v15  ;;  %v1104_v15 = vld [vmem:[%s2734_s13 + $0xb0] sm:$0xff] }
 0x5d0   :  { %1173 = vmatpush1.bf16.msra.mxu0 %v1132_v18  ;;  %v1142_v16 = vpack.c.bf16 %v1104_v15, %v1101_v14  ;;  %v1100_v18 = vld [vmem:[%s2734_s13 + $0x90] sm:$0xff] }
 0x5d1   :  { %1174 = vmatprep.subr.bf16.mxu0 %v1136_v24  ;;  %v1141_v23 = vpack.c.bf16 %v1103_v20, %v1100_v18  ;;  %v1105_v24 = vld [vmem:[%s2734_s13 + $0xb8] sm:$0xff]  ;;  %v1157_v20 = vlaneseq }
 0x5d2   :  { %v1143_v25 = vpack.c.bf16 %v1105_v24, %v1102_v22 }
 0x5d3   :  { %v1158_v22 = vshrl.u32 %v1157_v20, 7 }
 0x5d4   :  { %1175 = vmatpush1.bf16.msra.mxu0 %v1135_v26  ;;  %v1107_v26 = vld [vmem:[%s2734_s13 + $0xc8] sm:$0xff] }
 0x5d5   :  { %1176 = vmatprep.subr.bf16.mxu0 %v1139_v8  ;;  %v1167_v24 = vsub.s32 2, %v1158_v22 }
 0x5d8   :  { %1177 = vmatpush1.bf16.msra.mxu0 %v1138_v12 }
 0x5d9   :  { %1178 = vmatprep.subr.bf16.mxu0 %v1142_v16 }
 0x5dc   :  { %1179 = vmatpush1.bf16.msra.mxu0 %v1141_v23  ;;  %v1159_v23 = vsub.s32 0, %v1158_v22 }
 0x68f   :  { %v861_v28 = vpop.f32.mrb[20].mxu0 }
 0x690   :  { %v862_v29 = vadd.f32 %v1465_v27, %v861_v28  ;;  %v1689_v30 = vpop.f32.mrb[21].mxu0  ;;  %v1106_v28 = vld [vmem:[%s2734_s13 + $0xc0] sm:$0xff] }
 0x691   :  { %v864_v31 = vpop.f32.mrb[22].mxu0  ;;  %v1109_v30 = vld [vmem:[%s2734_s13 + $0xd8] sm:$0xff] }
 0x692   :  { %v870_v32 = vmul.f32 0.01, %v862_v29  ;;  %v865_v33 = vadd.f32 %v1465_v27, %v864_v31  ;;  %v1690_v34 = vpop.f32.mrb[23].mxu0  ;;  %vm868_vm2 = vcmp.gt.f32.partialorder %v862_v29, 0.0  ;;  %v1110_v27 = vld [vmem:[%s2734_s13 + $0xe0] sm:$0xff]  ;;  %v1108_v31 = vld [vmem:[%s2734_s13 + $0xd0] sm:$0xff] }
 0x694   :  { %vm869_vm3 = vcmp.gt.f32.partialorder %v865_v33, 0.0  ;;  %v871_v37 = vmul.f32 0.01, %v865_v33  ;;  %v872_v38 = vsel %vm868_vm2, %v862_v29, %v870_v32  ;;  %v1145_v29 = vpack.c.bf16 %v1110_v27, %v1107_v26  ;;  %v1111_v32 = vld [vmem:[%s2734_s13 + $0xe8] sm:$0xff] }
 0x695   :  { %v1146_v34 = vpack.c.bf16 %v1111_v32, %v1108_v31  ;;  %v1163_v26 = vsub.s32 1, %v1158_v22  ;;  %v1256_v31 = vld [vmem:[#allocation8] sm:$0xff] }
 0x696   :  { %v873_v39 = vsel %vm869_vm3, %v865_v33, %v871_v37  ;;  %v1144_v33 = vpack.c.bf16 %v1109_v30, %v1106_v28  ;;  %v1112_v37 = vld [vmem:[%s2734_s13 + $0xf0] sm:$0xff]  ;;  %1180 = vmatprep.subr.bf16.mxu0 %v1145_v29 }
 0x697   :  { %v885_v41 = vpack.c.bf16 %v873_v39, %v872_v38  ;;  %v1148_v38 = vpack.c.bf16 %v1116_v36, %v1113_v35  ;;  %v1115_v39 = vld [vmem:[%s2734_s13 + $0x108] sm:$0xff] }
 0x698   :  { %1181 = vmatpush1.bf16.msra.mxu0 %v1144_v33  ;;  %v1147_v43 = vpack.c.bf16 %v1115_v39, %v1112_v37  ;;  %v1258_v33 = vld [vmem:[#allocation8 + $0x10] sm:$0xff] }
 0x699   :  { %1700 = vmatmul.mubr.msk.bf16.vlgmr.msra.gmra.mrb[20].mxu1 %vm135_vm1, %v885_v41  ;;  %v1117_v41 = vld [vmem:[%s2734_s13 + $0x118] sm:$0xff]  ;;  %1182 = vmatprep.subr.bf16.mxu0 %v1148_v38 }
 0x69a   :  { %1716 = vmatpush3.bf16.msra.mxu1 %v1026_v40  ;;  %1723 = vmatprep.mubr.msk.bf16.mxu1 %vm1917_vm0, %v1916_v0  ;;  %v1114_v40 = vld [vmem:[%s2734_s13 + $0x100] sm:$0xff] }
 0x69b   :  { %1717 = vmatprep.subr.bf16.mxu1 %v1916_v0  ;;  %v1149_v45 = vpack.c.bf16 %v1117_v41, %v1114_v40  ;;  %v1259_v40 = vld [vmem:[#allocation8 + $0x18] sm:$0xff] }
 0x69c   :  { %1183 = vmatpush1.bf16.msra.mxu0 %v1147_v43  ;;  %v1261_v43 = vld [vmem:[#allocation8 + $0x28] sm:$0xff] }
 0x69e   :  { %1718 = vmatpush3.bf16.msra.mxu1 %v1027_v46  ;;  %v1119_v46 = vld [vmem:[%s2734_s13 + $0x128] sm:$0xff] }
 0x69f   :  { %v1007_v51 = vpop.f32.mrb[24].mxu0  ;;  %1719 = vmatprep.subr.bf16.mxu1 %v1916_v0  ;;  %v1151_v48 = vpack.c.bf16 %v1122_v47, %v1119_v46 }
 0x6a0   :  { %v1008_v54 = vadd.f32 %v1470_v49, %v1007_v51  ;;  %v1713_v55 = vpop.f32.mrb[25].mxu0  ;;  %v1120_v51 = vld [vmem:[%s2734_s13 + $0x130] sm:$0xff] }
 0x6a1   :  { %v1010_v56 = vpop.f32.mrb[26].mxu0  ;;  %1184 = vmatprep.subr.bf16.mxu0 %v1151_v48  ;;  %v1125_v55 = vld [vmem:[%s2734_s13 + $0x158] sm:$0xff] }
 0x6a2   :  { %v1014_v57 = vmax.f32 %v1008_v54, 0.0  ;;  %v1011_v58 = vadd.f32 %v1470_v49, %v1010_v56  ;;  %v1714_v59 = vpop.f32.mrb[27].mxu0  ;;  %1720 = vmatpush3.bf16.msra.mxu1 %v1028_v50  ;;  %v1118_v49 = vld [vmem:[%s2734_s13 + $0x120] sm:$0xff]  ;;  %v1121_v50 = vld [vmem:[%s2734_s13 + $0x138] sm:$0xff]  ;;  %v1152_v54 = vpack.c.bf16 %v1123_v53, %v1120_v51  ;;  %v1128_v56 = vld [vmem:[%s2734_s13 + $0x170] sm:$0xff] }
 0x6a3   :  { %1721 = vmatprep.subr.bf16.mxu1 %v1916_v0  ;;  %v1150_v52 = vpack.c.bf16 %v1121_v50, %v1118_v49  ;;  %v1127_v59 = vld [vmem:[%s2734_s13 + $0x168] sm:$0xff]  ;;  %v1257_v51 = vld [vmem:[#allocation8 + $0x8] sm:$0xff] }
 0x6a4   :  { %v1015_v63 = vmax.f32 %v1011_v58, 0.0  ;;  %v1124_v58 = vld [vmem:[%s2734_s13 + $0x150] sm:$0xff] }
 0x6a5   :  { %1185 = vmatpush1.bf16.msra.mxu0 %v1150_v52  ;;  %v1153_v61 = vpack.c.bf16 %v1127_v59, %v1124_v58  ;;  %v1260_v58 = vld [vmem:[#allocation8 + $0x20] sm:$0xff] }
 0x6a6   :  { %v1025_v1 = vpack.c.bf16 %v1015_v63, %v1014_v57  ;;  %1722 = vmatpush3.bf16.msra.mxu1 %v1029_v60  ;;  %v1154_v57 = vpack.c.bf16 %v1128_v56, %v1125_v55  ;;  %v1126_v60 = vld [vmem:[%s2734_s13 + $0x160] sm:$0xff] }
 0x6a7   :  { %1727 = vmatprep.subr.bf16.mxu1 %v1916_v0  ;;  %v1155_v63 = vpack.c.bf16 %v1129_v62, %v1126_v60 }
 0x6a8   :  { %1186 = vmatprep.subr.bf16.mxu0 %v1154_v57 }
 0x6a9   :  { %1724 = vmatmul.mubr.msk.bf16.vlgmr.msra.gmra.mrb[24].mxu1 %vm135_vm1, %v1025_v1  ;;  %1187 = vmatpush1.bf16.msra.mxu0 %v1153_v61  ;;  %v1918_v1 = vmov 0  }
 0x6aa   :  { %1728 = vmatpush3.bf16.msra.mxu1 %v1134_v2  ;;  %1743 = vmatprep.mubr.msk.bf16.mxu1 %vm1917_vm0, %v1916_v0  ;;  %v1468_v2 = vld [vmem:[%s2729_s8 + $0x2] ss:$0 sm:$0xff]  ;;  %vm1272_vm0 = vcmask 359424  }
 0x6ab   :  { %1729 = vmatprep.subr.bf16.mxu1 %v1916_v0  ;;  %1204 = vmatprep.mubr.bf16.mxu0 %v1918_v1  ;;  %v2637_v1 = vand.u32 127, %v1157_v20 }
 0x6ae   :  { %1730 = vmatpush3.bf16.msra.mxu1 %v1137_v5 }
 0x6af   :  { %1731 = vmatprep.subr.bf16.mxu1 %v1916_v0 }
 0x6b2   :  { %1732 = vmatpush3.bf16.msra.mxu1 %v1140_v21 }
 0x6b3   :  { %1733 = vmatprep.subr.bf16.mxu1 %v1916_v0 }
 0x6b6   :  { %1734 = vmatpush3.bf16.msra.mxu1 %v1143_v25  ;;  %v1130_v25 = vld [vmem:[%s2735_s14] sm:$0x7] }
 0x6b7   :  { %1735 = vmatprep.subr.bf16.mxu1 %v1916_v0  ;;  %v1160_v27 = vrot.slane %v1130_v25, %v1159_v23  ;;  %v1168_v28 = vrot.slane %v1130_v25, %v1167_v24  ;;  %v1164_v29 = vrot.slane %v1130_v25, %v1163_v26 }
 0x6ba   :  { %1736 = vmatpush3.bf16.msra.mxu1 %v1146_v34 }
 0x6bb   :  { %1737 = vmatprep.subr.bf16.mxu1 %v1916_v0 }
 0x6be   :  { %1738 = vmatpush3.bf16.msra.mxu1 %v1149_v45 }
 0x6bf   :  { %1739 = vmatprep.subr.bf16.mxu1 %v1916_v0 }
 0x6c2   :  { %1740 = vmatpush3.bf16.msra.mxu1 %v1152_v54 }
 0x6c3   :  { %1741 = vmatprep.subr.bf16.mxu1 %v1916_v0 }
 0x6c6   :  { %1742 = vmatpush3.bf16.msra.mxu1 %v1155_v63 }
 0x76c   :  { %v933_v3 = vpop.f32.mrb[20].mxu1 }
 0x76d   :  { %v934_v4 = vadd.f32 %v1468_v2, %v933_v3  ;;  %v1701_v5 = vpop.f32.mrb[21].mxu1 }
 0x76e   :  { %v936_v6 = vpop.f32.mrb[22].mxu1 }
 0x76f   :  { %951 = vst.msk [vmem:[#allocation10 + $0x8] sm:$0xff] %vm135_vm1, %v934_v4  ;;  %v937_v7 = vadd.f32 %v1468_v2, %v936_v6  ;;  %v1702_v8 = vpop.f32.mrb[23].mxu1  ;;  %v2640_v2 = vadd.s32 256, %v2637_v1  ;;  %v2643_v4 = vadd.s32 128, %v2637_v1 }
 0x771   :  { %953 = vst.msk [vmem:[#allocation10 + $0x18] sm:$0xff] %vm135_vm1, %v937_v7 }
 0x77c   :  { %v1073_v10 = vpop.f32.mrb[24].mxu1 }
 0x77d   :  { %v1074_v11 = vadd.f32 %v1472_v9, %v1073_v10  ;;  %v1725_v12 = vpop.f32.mrb[25].mxu1 }
 0x77e   :  { %v1076_v13 = vpop.f32.mrb[26].mxu1 }
 0x77f   :  { %v1077_v21 = vadd.f32 %v1472_v9, %v1076_v13  ;;  %v1726_v14 = vpop.f32.mrb[27].mxu1  ;;  %v1080_v15 = vmax.f32 %v1074_v11, 0.0 }
 0x781   :  { %v1081_v16 = vmax.f32 %v1077_v21, 0.0 }
 0x783   :  { %v1131_v18 = vpack.c.bf16 %v1081_v16, %v1080_v15 }
 0x785   :  { %1205 = vmatmul.mubr.bf16.vlgmr.msra.gmra.mrb[28].mxu0 %v1131_v18  ;;  %1744 = vmatmul.mubr.bf16.vlgmr.msra.gmra.mrb[28].mxu1 %v1131_v18 }
 0x858   :  { %v1206_v30 = vpop.f32.mrb[28].mxu0  ;;  %v1249_v32 = vpop.f32.mrb[28].mxu1 }
 0x859   :  { %v1207_v34 = vadd.f32 %v1206_v30, %v1160_v27  ;;  %v1250_v35 = vadd.f32 %v1249_v32, %v1168_v28  ;;  %v1208_v36 = vpop.f32.mrb[29].mxu0  ;;  %v1745_v37 = vpop.f32.mrb[29].mxu1  ;;  %v1433_v32 = vld [vmem:[%s2729_s8 + $0x1] ss:$0 sm:$0xff] }
 0x85a   :  { %v1209_v38 = vadd.f32 %v1208_v36, %v1164_v29  ;;  %v1210_v39 = vpop.f32.mrb[30].mxu0  ;;  %v1252_v41 = vpop.f32.mrb[30].mxu1 }
 0x85b   :  { %v1262_v45 = vadd.f32 %v1256_v31, %v1207_v34  ;;  %v1264_v46 = vadd.f32 %v1258_v33, %v1250_v35  ;;  %v1211_v47 = vadd.f32 %v1210_v39, %v1160_v27  ;;  %v1253_v48 = vadd.f32 %v1252_v41, %v1168_v28  ;;  %v1212_v49 = vpop.f32.mrb[31].mxu0  ;;  %v1746_v50 = vpop.f32.mrb[31].mxu1 }
 0x85c   :  { %v1213_v55 = vadd.f32 %v1212_v49, %v1164_v29  ;;  %v1263_v56 = vadd.f32 %v1257_v51, %v1209_v38  ;;  %v665_v33 = vadd.f32 %v1433_v32, %v2397_v44  ;;  %v662_v34 = vadd.f32 %v1433_v32, %v2395_v42  ;;  %v1398_v38 = vld [vmem:[%s2729_s8] ss:$0 sm:$0xff]  ;;  %s1921_s8 = smov [#allocation11]  }
 0x85d   :  { %v1265_v52 = vadd.f32 %v1259_v40, %v1211_v47  ;;  %v1267_v53 = vadd.f32 %v1261_v43, %v1253_v48  ;;  %v1273_v54 = vsel %vm1272_vm0, %v1264_v46, -inf  ;;  %v384_v43 = vadd.f32 %v1398_v38, %v2284_v17  ;;  %s1374_s23 = sshll.u32 %s1921_s8, 4  ;;  %s2677_s23 = int_to_ptr.vmem [resolvable:$true] %s1374_s23 }
 0x85e   :  { %v1274_v57 = vmax.f32 %v1262_v45, %v1273_v54  ;;  %v1266_v62 = vadd.f32 %v1260_v58, %v1213_v55  ;;  %v387_v50 = vadd.f32 %v1398_v38, %v2286_v19 }
 0x85f   :  { %v1278_v59 = vsel %vm1272_vm0, %v1267_v53, -inf }
 0x860   :  { %v1275_v60 = vmax.f32 %v1274_v57, %v1263_v56  ;;  %v1279_v61 = vmax.f32 %v1265_v52, %v1278_v59 }
 0x862   :  { %1276 = vmax.xlane.f32.xlu0 %v1275_v60  ;;  %v1280_v63 = vmax.f32 %v1279_v61, %v1266_v62 }
 0x866   :  { %1281 = vmax.xlane.f32.xlu0 %v1280_v63 }
 0x8ef   :  { %v1277_v3 = vpop.xlane.xlu0 %1276 }
 0x8f0   :  { %vm1283_vm4 = vcmp.ge.f32.partialorder %v1262_v45, %v1277_v3  ;;  %vm1285_vm5 = vcmp.ge.f32.partialorder %v1264_v46, %v1277_v3  ;;  %vm1284_vm6 = vcmp.ge.f32.partialorder %v1263_v56, %v1277_v3 }
 0x8f1   :  { %v1289_v5 = vsel %vm1283_vm4, %v2637_v1, 300  ;;  %v1291_v6 = vsel %vm1285_vm5, %v2640_v2, 300  ;;  %v1290_v9 = vsel %vm1284_vm6, %v2643_v4, 300 }
 0x8f2   :  { %v1295_v7 = vsel %vm1272_vm0, %v1291_v6, 2147483647 }
 0x8f3   :  { %vm1296_vm7 = vcmp.lt.s32.totalorder %v1289_v5, %v1295_v7  ;;  %v1282_v8 = vpop.xlane.xlu0 %1281 }
 0x8f4   :  { %vm1286_vm8 = vcmp.ge.f32.partialorder %v1265_v52, %v1282_v8  ;;  %vm1288_vm9 = vcmp.ge.f32.partialorder %v1267_v53, %v1282_v8  ;;  %v1297_v10 = vsel %vm1296_vm7, %v1289_v5, %v1295_v7  ;;  %vm1287_vm10 = vcmp.ge.f32.partialorder %v1266_v62, %v1282_v8 }
 0x8f5   :  { %v1292_v11 = vsel %vm1286_vm8, %v2637_v1, 300  ;;  %v1294_v12 = vsel %vm1288_vm9, %v2640_v2, 300  ;;  %vm1298_vm11 = vcmp.lt.s32.totalorder %v1297_v10, %v1290_v9  ;;  %v1293_v15 = vsel %vm1287_vm10, %v2643_v4, 300 }
 0x8f6   :  { %v1314_v13 = vsel %vm1272_vm0, %v1294_v12, 2147483647  ;;  %v1299_v21 = vsel %vm1298_vm11, %v1297_v10, %v1290_v9 }
 0x8f7   :  { %vm1315_vm12 = vcmp.lt.s32.totalorder %v1292_v11, %v1314_v13  ;;  %v1301_v14 = vshra.s32 %v1299_v21, 16  ;;  %v1300_v24 = vand.u32 65535, %v1299_v21 }
 0x8f8   :  { %v1316_v16 = vsel %vm1315_vm12, %v1292_v11, %v1314_v13 }
 0x8f9   :  { %v1303_v18 = vcvt.s32.f32 %v1301_v14  ;;  %vm1317_vm13 = vcmp.lt.s32.totalorder %v1316_v16, %v1293_v15  ;;  %v1302_v26 = vcvt.s32.f32 %v1300_v24 }
 0x8fa   :  { %v1318_v20 = vsel %vm1317_vm13, %v1316_v16, %v1293_v15 }
 0x8fb   :  { %1304 = vmin.xlane.f32.xlu1 %v1303_v18  ;;  %v1320_v22 = vshra.s32 %v1318_v20, 16  ;;  %v1319_v27 = vand.u32 65535, %v1318_v20 }
 0x8fd   :  { %v1322_v23 = vcvt.s32.f32 %v1320_v22  ;;  %v1321_v30 = vcvt.s32.f32 %v1319_v27 }
 0x8ff   :  { %1323 = vmin.xlane.f32.xlu1 %v1322_v23 }
 0x988   :  { %v1305_v25 = vpop.xlane.xlu1 %1304 }
 0x989   :  { %vm1306_vm14 = vcmp.eq.f32.partialorder %v1303_v18, %v1305_v25  ;;  %v1311_v35 = vcvt.f32.s32 %v1305_v25 }
 0x98a   :  { %v1307_v28 = vsel %vm1306_vm14, %v1302_v26, inf }
 0x98b   :  { %1308 = vmin.xlane.f32.xlu0 %v1307_v28  ;;  %v1312_v39 = vshll.u32 %v1311_v35, 16 }
 0x98c   :  { %v1324_v29 = vpop.xlane.xlu1 %1323 }
 0x98d   :  { %vm1325_vm15 = vcmp.eq.f32.partialorder %v1322_v23, %v1324_v29  ;;  %v1330_v36 = vcvt.f32.s32 %v1324_v29 }
 0x98e   :  { %v1326_v31 = vsel %vm1325_vm15, %v1321_v30, inf }
 0x98f   :  { %1327 = vmin.xlane.f32.xlu1 %v1326_v31  ;;  %v1331_v45 = vshll.u32 %v1330_v36, 16 }
 0x9a0   :  { %944 = vrot.lane.b32.xlu1 %v665_v33, %s1919_s26 }
 0x9a1   :  { %942 = vrot.lane.b32.xlu0 %v662_v34, %s1919_s26 }
 0xa18   :  { %v1309_v37 = vpop.xlane.xlu0 %1308 }
 0xa19   :  { %v1310_v40 = vcvt.f32.s32 %v1309_v37 }
 0xa1b   :  { %v1313_v41 = vadd.s32 %v1312_v39, %v1310_v40 }
 0xa1c   :  { %v1328_v46 = vpop.xlane.xlu1 %1327  ;;  %v943_v44 = vpop.permute.xlu0 %942 }
 0xa1d   :  { %vm1333_vm2 = vcmp.eq.s32.totalorder %v2637_v1, %v1313_v41  ;;  %vm1334_vm3 = vcmp.eq.s32.totalorder %v2643_v4, %v1313_v41  ;;  %vm1335_vm4 = vcmp.eq.s32.totalorder %v2640_v2, %v1313_v41  ;;  %v1329_v42 = vcvt.f32.s32 %v1328_v46 }
 0xa1e   :  { %v1474_v47 = vsel %vm1333_vm2, 1.0, %v1916_v0  ;;  %v1475_v48 = vsel %vm1334_vm3, 1.0, %v1916_v0  ;;  %v1476_v49 = vsel %vm1335_vm4, 1.0, %v1916_v0  ;;  %v948_v17 = vsel %vm135_vm1, %v384_v43, %v943_v44 }
 0xa1f   :  { %1351 = vst [vmem:[#allocation11] sm:$0xff] %v1474_v47  ;;  %1352 = vst [vmem:[#allocation11 + $0x8] sm:$0xff] %v1475_v48  ;;  %v1332_v51 = vadd.s32 %v1331_v45, %v1329_v42 }
 0xa20   :  { %1353 = vst.msk [vmem:[#allocation11 + $0x10] sm:$0xff] %vm1272_vm0, %v1476_v49  ;;  %950 = vst [vmem:[#allocation10] sm:$0xff] %v948_v17  ;;  %v945_v52 = vpop.permute.xlu1 %944 }
 0xa21   :  { %vm1336_vm5 = vcmp.eq.s32.totalorder %v2637_v1, %v1332_v51  ;;  %vm1337_vm6 = vcmp.eq.s32.totalorder %v2643_v4, %v1332_v51  ;;  %vm1338_vm7 = vcmp.eq.s32.totalorder %v2640_v2, %v1332_v51  ;;  %v949_v19 = vsel %vm135_vm1, %v387_v50, %v945_v52 }
 0xa22   :  { %v1477_v53 = vsel %vm1336_vm5, 1.0, %v1916_v0  ;;  %v1478_v54 = vsel %vm1337_vm6, 1.0, %v1916_v0  ;;  %v1479_v55 = vsel %vm1338_vm7, 1.0, %v1916_v0  ;;  %952 = vst [vmem:[#allocation10 + $0x10] sm:$0xff] %v949_v19 }
 0xa23   :  { %1354 = vst [vmem:[#allocation11 + $0x18] sm:$0xff] %v1477_v53  ;;  %1355 = vst [vmem:[#allocation11 + $0x20] sm:$0xff] %v1478_v54 }
 0xa24   :  { %1356 = vst.msk [vmem:[#allocation11 + $0x28] sm:$0xff] %vm1272_vm0, %v1479_v55 }
 0xa25   :  { %1863 = shalt.err (!%p1860_p8)
}
 0xa26   :  { %s1864_s4 = scalar_lea.hbm %s2737_s16, 512 }
 0xa27   :  { %p1865_p9 = scmp.ne.s32.totalorder %s2737_s16, %s1864_s4  ;;  %p1868_p10 = scmp.lt.u32.totalorder %s1864_s4, %s2737_s16 }
 0xa29   :  { %p1870_p11 = pnand %p1868_p10, %p1865_p9 }
 0xa2b   :  { %1873 = shalt.err (!%p1870_p11)
}
 0xa2c   :  { %s1922_s30 = smov 256   ;;  %s2748_s11 = smov 16  }
 0xa2d   :  { %1368 = dma.vmem_to_hbm [thread:$0]  %s2671_s22, 512, %s2737_s16, [#allocation4], %s1922_s30, %s1922_s30, %s2748_s11  }
 0xa2e   :  { %s1874_s25 = scalar_lea.vmem %s2677_s23, 768  ;;  %p1879_p13 = scmp.lt.s32.totalorder %s2677_s23, %s2677_s23 }
 0xa2f   :  { %p1875_p12 = scmp.ne.s32.totalorder %s2677_s23, %s1874_s25  ;;  %p1880_p0 = scmp.lt.s32.totalorder %s1874_s25, %s1874_s25 }
 0xa31   :  { %p1881_p1 = por %p1880_p0, %p1879_p13 }
 0xa33   :  { %p1882_p2 = pnand %p1881_p1, %p1875_p12 }
 0xa35   :  { %1885 = shalt.err (!%p1882_p2)
}
 0xa36   :  { %s2749_s13 = sld [smem:[#allocation20_spill]] }
 0xa3c   :  { %s1886_s15 = scalar_lea.hbm %s2749_s13, 768 }
 0xa3d   :  { %p1887_p3 = scmp.ne.s32.totalorder %s2749_s13, %s1886_s15  ;;  %p1890_p4 = scmp.lt.u32.totalorder %s1886_s15, %s2749_s13 }
 0xa3f   :  { %p1892_p5 = pnand %p1890_p4, %p1887_p3 }
 0xa41   :  { %1895 = shalt.err (!%p1892_p5)
}
 0xa42   :  { %1380 = dma.vmem_to_hbm [thread:$0]  %s2677_s23, 768, %s2749_s13, [#allocation12], %s1914_s7, %s1914_s7, %s1915_s6  }
 0xa43   :  { %1902 = dma.done.wait [#allocation4], 512  }
 0xa44   :  { %1903 = vsyncadd [#allocation4], 4294966784 }
 0xa45   :  { %1904 = dma.done.wait [#allocation12], 768  }
 0xa46   :  { %1905 = vsyncadd [#allocation12], 4294966528 }
 0xa47   :  { %1387 = vsyncpa [#allocation3], 1 }
 0xa48   :  { %1388 = vsyncpa [#allocation6], 1 }
 0xa49   :  { %1389 = vsyncpa [#allocation9], 1 }
 0xa4a   :  { %1390 = vsyncpa [#allocation4], 1 }
 0xa4b   :  { %1391 = vsyncpa [#allocation12], 1 }

</bundles_post_ra>
